<compile_context>
chip_gen: v7x
topology: tpu7x:2x2x1
jax: 0.10.0
libtpu: 0.0.40
codegen_flags: <defaults>
</compile_context>

<pallas_src>
import functools

import jax
import jax.numpy as jnp
from jax.experimental import pallas as pl
from jax.experimental.pallas import tpu as pltpu

Z_DIM = 20
IMG_SIZE = 28
INPUT_SIZE = IMG_SIZE * IMG_SIZE  # 784
HIDDEN = 400
# 256-row batch tiles keep resident weights + double-buffered x/recon tiles +
# f32 temporaries well under VMEM on all of v5e (16 MiB scoped) / v6e / v7x
# (64 MiB physical) while amortizing the ~0.35 us per-grid-step overhead.
DEFAULT_TILE_B = 256


def _round_up(n, m):
    return ((n + m - 1) // m) * m


def vae_forward_kernel(
    x_ref,                 # (TB, 784)   bf16
    eps_ref,               # (TB, Z)     f32   pre-sampled standard normal
    w1_ref, b1_ref,        # (784, 400)  bf16, (1, 400) f32
    w2122_ref, b2122_ref,  # (400, 2Z)   bf16, (1, 2Z)  f32   fused fc21|fc22
    w3_ref, b3_ref,        # (Z, 400)    bf16, (1, 400) f32
    w4_ref, b4_ref,        # (400, 784)  bf16, (1, 784) f32
    recon_ref,             # (TB, 784)   f32
    mulv_ref,              # (TB, 2Z)    f32   = [mu | logvar]
):
    x = x_ref[...]

    # ---- encode ----
    h1 = jnp.dot(x, w1_ref[...], preferred_element_type=jnp.float32) + b1_ref[...]
    h1 = jnp.maximum(h1, 0.0)  # relu
    mulv = (
        jnp.dot(h1.astype(jnp.bfloat16), w2122_ref[...],
                preferred_element_type=jnp.float32)
        + b2122_ref[...]
    )
    mu = mulv[:, :Z_DIM]
    logvar = mulv[:, Z_DIM:]

    # ---- reparameterize ----
    std = jnp.exp(0.5 * logvar)
    z = mu + eps_ref[...] * std

    # ---- decode ----
    h3 = (
        jnp.dot(z.astype(jnp.bfloat16), w3_ref[...],
                preferred_element_type=jnp.float32)
        + b3_ref[...]
    )
    h3 = jnp.maximum(h3, 0.0)  # relu
    logits = (
        jnp.dot(h3.astype(jnp.bfloat16), w4_ref[...],
                preferred_element_type=jnp.float32)
        + b4_ref[...]
    )

    recon_ref[...] = jax.nn.sigmoid(logits).astype(recon_ref.dtype)
    mulv_ref[...] = mulv.astype(mulv_ref.dtype)


def init_params(key, z_dim=Z_DIM, input_size=INPUT_SIZE, hidden=HIDDEN):
    """Deterministic PyTorch-style init: U(-1/sqrt(fan_in), 1/sqrt(fan_in)).
    Weights stored transposed: (in_features, out_features), float32."""
    def linear(key, fan_in, fan_out):
        kw, kb = jax.random.split(key)
        bound = 1.0 / jnp.sqrt(jnp.float32(fan_in))
        w = jax.random.uniform(kw, (fan_in, fan_out), jnp.float32, -bound, bound)
        b = jax.random.uniform(kb, (1, fan_out), jnp.float32, -bound, bound)
        return w, b

    k1, k21, k22, k3, k4 = jax.random.split(key, 5)
    return {
        "fc1": linear(k1, input_size, hidden),
        "fc21": linear(k21, hidden, z_dim),
        "fc22": linear(k22, hidden, z_dim),
        "fc3": linear(k3, z_dim, hidden),
        "fc4": linear(k4, hidden, input_size),
    }


@functools.partial(jax.jit, static_argnames=("tile_b",))
def vae_simple_forward(x_nchw, eps, params, tile_b=DEFAULT_TILE_B):
    """x_nchw: (B, 1, 28, 28) float32 (NCHW, like PyTorch); eps: (B, Z) f32.
    Returns (recon (B,784), mu (B,Z), logvar (B,Z))."""
    B = x_nchw.shape[0]
    x = x_nchw.reshape(B, INPUT_SIZE).astype(jnp.float32)  # x.view(-1, input_size)

    w1, b1 = params["fc1"]
    w21, b21 = params["fc21"]
    w22, b22 = params["fc22"]
    w3, b3 = params["fc3"]
    w4, b4 = params["fc4"]

    # Fuse fc21/fc22 into one (400, 2Z) projection; bf16 weights for the MXU.
    w2122 = jnp.concatenate([w21, w22], axis=1).astype(jnp.bfloat16)
    b2122 = jnp.concatenate([b21, b22], axis=1)
    w1b = w1.astype(jnp.bfloat16)
    w3b = w3.astype(jnp.bfloat16)
    w4b = w4.astype(jnp.bfloat16)

    # Batch tiling: pad B up to a multiple of the (8-aligned) tile.
    tb = min(tile_b, _round_up(B, 8))
    pB = _round_up(B, tb)
    if pB != B:
        x = jnp.pad(x, ((0, pB - B), (0, 0)))
        eps = jnp.pad(eps, ((0, pB - B), (0, 0)))
    xb = x.astype(jnp.bfloat16)
    eps = eps.astype(jnp.float32)

    recon, mulv = pl.pallas_call(
        vae_forward_kernel,
        out_shape=(
            jax.ShapeDtypeStruct((pB, INPUT_SIZE), jnp.float32),
            jax.ShapeDtypeStruct((pB, 2 * Z_DIM), jnp.float32),
        ),
        grid=(pB // tb,),
        in_specs=[
            pl.BlockSpec((tb, INPUT_SIZE), lambda i: (i, 0)),        # x
            pl.BlockSpec((tb, Z_DIM), lambda i: (i, 0)),             # eps
            pl.BlockSpec((INPUT_SIZE, HIDDEN), lambda i: (0, 0)),    # w1 (resident)
            pl.BlockSpec((1, HIDDEN), lambda i: (0, 0)),             # b1
            pl.BlockSpec((HIDDEN, 2 * Z_DIM), lambda i: (0, 0)),     # w21|w22
            pl.BlockSpec((1, 2 * Z_DIM), lambda i: (0, 0)),          # b21|b22
            pl.BlockSpec((Z_DIM, HIDDEN), lambda i: (0, 0)),         # w3
            pl.BlockSpec((1, HIDDEN), lambda i: (0, 0)),             # b3
            pl.BlockSpec((HIDDEN, INPUT_SIZE), lambda i: (0, 0)),    # w4
            pl.BlockSpec((1, INPUT_SIZE), lambda i: (0, 0)),         # b4
        ],
        out_specs=(
            pl.BlockSpec((tb, INPUT_SIZE), lambda i: (i, 0)),        # recon
            pl.BlockSpec((tb, 2 * Z_DIM), lambda i: (i, 0)),         # mu|logvar
        ),
        compiler_params=pltpu.CompilerParams(
            dimension_semantics=("parallel",),
            vmem_limit_bytes=64 * 1024 * 1024,
        ),
    )(xb, eps, w1b, b1, w2122, b2122, w3b, b3, w4b, b4)

    recon = recon[:B]
    mu = mulv[:B, :Z_DIM]
    logvar = mulv[:B, Z_DIM:]
    return recon, mu, logvar


def reference_forward(x_nchw, eps, params):
    """Pure-JAX f32 reference for sanity checking."""
    B = x_nchw.shape[0]
    x = x_nchw.reshape(B, INPUT_SIZE)
    w1, b1 = params["fc1"]
    w21, b21 = params["fc21"]
    w22, b22 = params["fc22"]
    w3, b3 = params["fc3"]
    w4, b4 = params["fc4"]
    h1 = jax.nn.relu(x @ w1 + b1)
    mu = h1 @ w21 + b21
    logvar = h1 @ w22 + b22
    z = mu + eps * jnp.exp(0.5 * logvar)
    h3 = jax.nn.relu(z @ w3 + b3)
    recon = jax.nn.sigmoid(h3 @ w4 + b4)
    return recon, mu, logvar


if __name__ == "__main__":
    key = jax.random.PRNGKey(0)
    kp, kx, ke = jax.random.split(key, 3)

    B = 2
    params = init_params(kp)
    x = jax.random.uniform(kx, (B, 1, IMG_SIZE, IMG_SIZE), jnp.float32)  # NCHW
    # TODO(synk): torch.randn_like inside reparameterize has no in-kernel RNG
    # equivalent used here; eps is sampled deterministically in host JAX and
    # fed to the kernel.
    eps = jax.random.normal(ke, (B, Z_DIM), jnp.float32)

    recon, mu, logvar = vae_simple_forward(x, eps, params)
    jax.block_until_ready((recon, mu, logvar))

    r_ref, m_ref, lv_ref = reference_forward(x, eps, params)
    assert recon.shape == (B, INPUT_SIZE)
    assert mu.shape == (B, Z_DIM) and logvar.shape == (B, Z_DIM)
    # bf16 matmul inputs with f32 accumulation -> loosened tolerances vs f32 ref.
    assert jnp.allclose(recon, r_ref, atol=2e-2, rtol=2e-2)
    assert jnp.allclose(mu, m_ref, atol=2e-2, rtol=2e-2)
    assert jnp.allclose(logvar, lv_ref, atol=2e-2, rtol=2e-2)

    print("KERNEL_OK")
</pallas_src>

<mosaic_0001>
module attributes {stable_mosaic.version = 11 : i64} {
  func.func @vae_forward_kernel(%arg0: i32, %arg1: memref<8x784xbf16, #tpu.memory_space<vmem>>, %arg2: memref<8x20xf32, #tpu.memory_space<vmem>>, %arg3: memref<784x400xbf16, #tpu.memory_space<vmem>>, %arg4: memref<1x400xf32, #tpu.memory_space<vmem>>, %arg5: memref<400x40xbf16, #tpu.memory_space<vmem>>, %arg6: memref<1x40xf32, #tpu.memory_space<vmem>>, %arg7: memref<20x400xbf16, #tpu.memory_space<vmem>>, %arg8: memref<1x400xf32, #tpu.memory_space<vmem>>, %arg9: memref<400x784xbf16, #tpu.memory_space<vmem>>, %arg10: memref<1x784xf32, #tpu.memory_space<vmem>>, %arg11: memref<8x784xf32, #tpu.memory_space<vmem>>, %arg12: memref<8x40xf32, #tpu.memory_space<vmem>>) attributes {dimension_semantics = [#tpu.dimension_semantics<parallel>], iteration_bounds = array<i64: 1>, scalar_prefetch = 0 : i64, scratch_operands = 0 : i64, tpu.core_type = #tpu.core_type<tc>, window_params = [{transform_indices = @transform_0, window_bounds = array<i64: 8, 784>}, {transform_indices = @transform_1, window_bounds = array<i64: 8, 20>}, {pipeline_mode = #tpu.pipeline_mode<synchronous>, transform_indices = @transform_2, window_bounds = array<i64: 784, 400>}, {pipeline_mode = #tpu.pipeline_mode<synchronous>, transform_indices = @transform_3, window_bounds = array<i64: 1, 400>}, {pipeline_mode = #tpu.pipeline_mode<synchronous>, transform_indices = @transform_4, window_bounds = array<i64: 400, 40>}, {pipeline_mode = #tpu.pipeline_mode<synchronous>, transform_indices = @transform_5, window_bounds = array<i64: 1, 40>}, {pipeline_mode = #tpu.pipeline_mode<synchronous>, transform_indices = @transform_6, window_bounds = array<i64: 20, 400>}, {pipeline_mode = #tpu.pipeline_mode<synchronous>, transform_indices = @transform_7, window_bounds = array<i64: 1, 400>}, {pipeline_mode = #tpu.pipeline_mode<synchronous>, transform_indices = @transform_8, window_bounds = array<i64: 400, 784>}, {pipeline_mode = #tpu.pipeline_mode<synchronous>, transform_indices = @transform_9, window_bounds = array<i64: 1, 784>}, {transform_indices = @transform_10, window_bounds = array<i64: 8, 784>}, {transform_indices = @transform_11, window_bounds = array<i64: 8, 40>}]} {
    %c0 = arith.constant 0 : index
    %c0_0 = arith.constant 0 : index
    %0 = vector.load %arg1[%c0, %c0_0] : memref<8x784xbf16, #tpu.memory_space<vmem>>, vector<8x784xbf16>
    %c0_1 = arith.constant 0 : index
    %c0_2 = arith.constant 0 : index
    %1 = vector.load %arg3[%c0_1, %c0_2] : memref<784x400xbf16, #tpu.memory_space<vmem>>, vector<784x400xbf16>
    %cst = arith.constant dense<0.000000e+00> : vector<8x400xf32>
    %2 = tpu.matmul %0, %1, %cst {dimension_numbers = #tpu.dot_dimension_numbers<[1], [0], [0], [1], [0, 0, 1, 1], [], []>} : vector<8x784xbf16>, vector<784x400xbf16>, vector<8x400xf32> -> vector<8x400xf32>
    %c0_3 = arith.constant 0 : index
    %c0_4 = arith.constant 0 : index
    %3 = vector.load %arg4[%c0_3, %c0_4] : memref<1x400xf32, #tpu.memory_space<vmem>>, vector<1x400xf32>
    %4 = vector.broadcast %3 : vector<1x400xf32> to vector<8x400xf32>
    %5 = arith.addf %2, %4 : vector<8x400xf32>
    %cst_5 = arith.constant 0.000000e+00 : f32
    %6 = vector.broadcast %cst_5 : f32 to vector<8x400xf32>
    %7 = arith.maximumf %5, %6 : vector<8x400xf32>
    %8 = arith.truncf %7 : vector<8x400xf32> to vector<8x400xbf16>
    %c0_6 = arith.constant 0 : index
    %c0_7 = arith.constant 0 : index
    %9 = vector.load %arg5[%c0_6, %c0_7] : memref<400x40xbf16, #tpu.memory_space<vmem>>, vector<400x40xbf16>
    %cst_8 = arith.constant dense<0.000000e+00> : vector<8x40xf32>
    %10 = tpu.matmul %8, %9, %cst_8 {dimension_numbers = #tpu.dot_dimension_numbers<[1], [0], [0], [1], [0, 0, 1, 1], [], []>} : vector<8x400xbf16>, vector<400x40xbf16>, vector<8x40xf32> -> vector<8x40xf32>
    %c0_9 = arith.constant 0 : index
    %c0_10 = arith.constant 0 : index
    %11 = vector.load %arg6[%c0_9, %c0_10] : memref<1x40xf32, #tpu.memory_space<vmem>>, vector<1x40xf32>
    %12 = vector.broadcast %11 : vector<1x40xf32> to vector<8x40xf32>
    %13 = arith.addf %10, %12 : vector<8x40xf32>
    %14 = vector.extract_strided_slice %13 {offsets = [0, 0], sizes = [8, 20], strides = [1, 1]} : vector<8x40xf32> to vector<8x20xf32>
    %15 = vector.extract_strided_slice %13 {offsets = [0, 20], sizes = [8, 20], strides = [1, 1]} : vector<8x40xf32> to vector<8x20xf32>
    %cst_11 = arith.constant 5.000000e-01 : f32
    %16 = vector.broadcast %cst_11 : f32 to vector<8x20xf32>
    %17 = arith.mulf %16, %15 : vector<8x20xf32>
    %18 = math.exp %17 : vector<8x20xf32>
    %c0_12 = arith.constant 0 : index
    %c0_13 = arith.constant 0 : index
    %19 = vector.load %arg2[%c0_12, %c0_13] : memref<8x20xf32, #tpu.memory_space<vmem>>, vector<8x20xf32>
    %20 = arith.mulf %19, %18 : vector<8x20xf32>
    %21 = arith.addf %14, %20 : vector<8x20xf32>
    %22 = arith.truncf %21 : vector<8x20xf32> to vector<8x20xbf16>
    %c0_14 = arith.constant 0 : index
    %c0_15 = arith.constant 0 : index
    %23 = vector.load %arg7[%c0_14, %c0_15] : memref<20x400xbf16, #tpu.memory_space<vmem>>, vector<20x400xbf16>
    %cst_16 = arith.constant dense<0.000000e+00> : vector<8x400xf32>
    %24 = tpu.matmul %22, %23, %cst_16 {dimension_numbers = #tpu.dot_dimension_numbers<[1], [0], [0], [1], [0, 0, 1, 1], [], []>} : vector<8x20xbf16>, vector<20x400xbf16>, vector<8x400xf32> -> vector<8x400xf32>
    %c0_17 = arith.constant 0 : index
    %c0_18 = arith.constant 0 : index
    %25 = vector.load %arg8[%c0_17, %c0_18] : memref<1x400xf32, #tpu.memory_space<vmem>>, vector<1x400xf32>
    %26 = vector.broadcast %25 : vector<1x400xf32> to vector<8x400xf32>
    %27 = arith.addf %24, %26 : vector<8x400xf32>
    %cst_19 = arith.constant 0.000000e+00 : f32
    %28 = vector.broadcast %cst_19 : f32 to vector<8x400xf32>
    %29 = arith.maximumf %27, %28 : vector<8x400xf32>
    %30 = arith.truncf %29 : vector<8x400xf32> to vector<8x400xbf16>
    %c0_20 = arith.constant 0 : index
    %c0_21 = arith.constant 0 : index
    %31 = vector.load %arg9[%c0_20, %c0_21] : memref<400x784xbf16, #tpu.memory_space<vmem>>, vector<400x784xbf16>
    %cst_22 = arith.constant dense<0.000000e+00> : vector<8x784xf32>
    %32 = tpu.matmul %30, %31, %cst_22 {dimension_numbers = #tpu.dot_dimension_numbers<[1], [0], [0], [1], [0, 0, 1, 1], [], []>} : vector<8x400xbf16>, vector<400x784xbf16>, vector<8x784xf32> -> vector<8x784xf32>
    %c0_23 = arith.constant 0 : index
    %c0_24 = arith.constant 0 : index
    %33 = vector.load %arg10[%c0_23, %c0_24] : memref<1x784xf32, #tpu.memory_space<vmem>>, vector<1x784xf32>
    %34 = vector.broadcast %33 : vector<1x784xf32> to vector<8x784xf32>
    %35 = arith.addf %32, %34 : vector<8x784xf32>
    %36 = arith.negf %35 : vector<8x784xf32>
    %37 = math.exp %36 : vector<8x784xf32>
    %cst_25 = arith.constant 1.000000e+00 : f32
    %38 = vector.broadcast %cst_25 : f32 to vector<8x784xf32>
    %39 = arith.addf %38, %37 : vector<8x784xf32>
    %40 = arith.divf %38, %39 : vector<8x784xf32>
    %c0_26 = arith.constant 0 : index
    %c0_27 = arith.constant 0 : index
    %41 = vector.load %arg11[%c0_26, %c0_27] : memref<8x784xf32, #tpu.memory_space<vmem>>, vector<8x784xf32>
    tpu.vector_store %arg11[%c0_26, %c0_27], %40 {strides = array<i32>} : memref<8x784xf32, #tpu.memory_space<vmem>>, vector<8x784xf32>,
    %c0_28 = arith.constant 0 : index
    %c0_29 = arith.constant 0 : index
    %42 = vector.load %arg12[%c0_28, %c0_29] : memref<8x40xf32, #tpu.memory_space<vmem>>, vector<8x40xf32>
    tpu.vector_store %arg12[%c0_28, %c0_29], %13 {strides = array<i32>} : memref<8x40xf32, #tpu.memory_space<vmem>>, vector<8x40xf32>,
    return
  }
  func.func @transform_0(%arg0: i32) -> (i32, i32) {
    %c0_i32 = arith.constant 0 : i32
    %c0_i32_0 = arith.constant 0 : i32
    return %arg0, %c0_i32 : i32, i32
  }
  func.func @transform_1(%arg0: i32) -> (i32, i32) {
    %c0_i32 = arith.constant 0 : i32
    %c0_i32_0 = arith.constant 0 : i32
    return %arg0, %c0_i32 : i32, i32
  }
  func.func @transform_2(%arg0: i32) -> (i32, i32) {
    %c0_i32 = arith.constant 0 : i32
    %c0_i32_0 = arith.constant 0 : i32
    %c0_i32_1 = arith.constant 0 : i32
    return %c0_i32, %c0_i32_0 : i32, i32
  }
  func.func @transform_3(%arg0: i32) -> (i32, i32) {
    %c0_i32 = arith.constant 0 : i32
    %c0_i32_0 = arith.constant 0 : i32
    %c0_i32_1 = arith.constant 0 : i32
    return %c0_i32, %c0_i32_0 : i32, i32
  }
  func.func @transform_4(%arg0: i32) -> (i32, i32) {
    %c0_i32 = arith.constant 0 : i32
    %c0_i32_0 = arith.constant 0 : i32
    %c0_i32_1 = arith.constant 0 : i32
    return %c0_i32, %c0_i32_0 : i32, i32
  }
  func.func @transform_5(%arg0: i32) -> (i32, i32) {
    %c0_i32 = arith.constant 0 : i32
    %c0_i32_0 = arith.constant 0 : i32
    %c0_i32_1 = arith.constant 0 : i32
    return %c0_i32, %c0_i32_0 : i32, i32
  }
  func.func @transform_6(%arg0: i32) -> (i32, i32) {
    %c0_i32 = arith.constant 0 : i32
    %c0_i32_0 = arith.constant 0 : i32
    %c0_i32_1 = arith.constant 0 : i32
    return %c0_i32, %c0_i32_0 : i32, i32
  }
  func.func @transform_7(%arg0: i32) -> (i32, i32) {
    %c0_i32 = arith.constant 0 : i32
    %c0_i32_0 = arith.constant 0 : i32
    %c0_i32_1 = arith.constant 0 : i32
    return %c0_i32, %c0_i32_0 : i32, i32
  }
  func.func @transform_8(%arg0: i32) -> (i32, i32) {
    %c0_i32 = arith.constant 0 : i32
    %c0_i32_0 = arith.constant 0 : i32
    %c0_i32_1 = arith.constant 0 : i32
    return %c0_i32, %c0_i32_0 : i32, i32
  }
  func.func @transform_9(%arg0: i32) -> (i32, i32) {
    %c0_i32 = arith.constant 0 : i32
    %c0_i32_0 = arith.constant 0 : i32
    %c0_i32_1 = arith.constant 0 : i32
    return %c0_i32, %c0_i32_0 : i32, i32
  }
  func.func @transform_10(%arg0: i32) -> (i32, i32) {
    %c0_i32 = arith.constant 0 : i32
    %c0_i32_0 = arith.constant 0 : i32
    return %arg0, %c0_i32 : i32, i32
  }
  func.func @transform_11(%arg0: i32) -> (i32, i32) {
    %c0_i32 = arith.constant 0 : i32
    %c0_i32_0 = arith.constant 0 : i32
    return %arg0, %c0_i32 : i32, i32
  }
}

</mosaic_0001>

<bundles_post_ra>
// kernel: vae_simple_forward.1
= control target key start
LH: loop header
LB: loop body
LE: loop exit
PB: predicated region body
PF: predicated region fallthrough
CT: control target
= control target key end

     0   :  { %17 = vsyncpa [#allocation3], 0  ;;  %s5541_s0 = inlined_call_operand.hbm [shape: bf16[8,784], index: 0, kind: input, shape index: {}]   ;;  %s5542_s1 = inlined_call_operand.hbm [shape: f32[8,20], index: 1, kind: input, shape index: {}]   ;;  %s5543_s2 = inlined_call_operand.hbm [shape: bf16[784,400], index: 2, kind: input, shape index: {}]   ;;  %s5544_s3 = inlined_call_operand.hbm [shape: f32[1,400], index: 3, kind: input, shape index: {}]   ;;  %s5545_s4 = inlined_call_operand.hbm [shape: bf16[400,40], index: 4, kind: input, shape index: {}]   ;;  %s5546_s5 = inlined_call_operand.hbm [shape: f32[1,40], index: 5, kind: input, shape index: {}]   ;;  %s5547_s6 = inlined_call_operand.hbm [shape: bf16[20,400], index: 6, kind: input, shape index: {}]   ;;  %s5548_s7 = inlined_call_operand.hbm [shape: f32[1,400], index: 7, kind: input, shape index: {}]   ;;  %s5549_s8 = inlined_call_operand.hbm [shape: bf16[400,784], index: 8, kind: input, shape index: {}]   ;;  %s5550_s9 = inlined_call_operand.hbm [shape: f32[1,784], index: 9, kind: input, shape index: {}]   ;;  %s5551_s10 = inlined_call_operand.hbm [shape: f32[8,784], index: 10, kind: output, shape index: {0}]   ;;  %s5552_s11 = inlined_call_operand.hbm [shape: f32[8,40], index: 11, kind: output, shape index: {1}]  }
   0x1   :  { %18 = vsyncpa [#allocation6], 0 }
   0x2   :  { %19 = vsyncpa [#allocation9], 0 }
   0x3   :  { %20 = vsyncpa [#allocation12], 0 }
   0x4   :  { %21 = vsyncpa [#allocation15], 0 }
   0x5   :  { %22 = vsyncpa [#allocation18], 0 }
   0x6   :  { %23 = vsyncpa [#allocation4], 0 }
   0x7   :  { %24 = vsyncpa [#allocation21], 0  ;;  %s5182_s17 = smov [#allocation5]   ;;  %s5183_s19 = smov [#allocation8]  }
   0x8   :  { %s41_s18 = sshll.u32 %s5182_s17, 4  ;;  %s63_s20 = sshll.u32 %s5183_s19, 4  ;;  %s42_s18 = int_to_ptr.vmem [resolvable:$true] %s41_s18  ;;  %s64_s20 = int_to_ptr.vmem [resolvable:$true] %s63_s20 }
   0x9   :  { %s4902_s23 = scalar_lea.hbm %s5542_s1, 128 }
   0xa   :  { %p4903_p0 = scmp.ne.s32.totalorder %s5542_s1, %s4902_s23  ;;  %p4906_p1 = scmp.lt.u32.totalorder %s4902_s23, %s5542_s1 }
   0xc   :  { %p4908_p2 = pnand %p4906_p1, %p4903_p0 }
   0xe   :  { %4911 = shalt.err (!%p4908_p2)
}
   0xf   :  { %s4912_s28 = scalar_lea.vmem %s42_s18, 128  ;;  %p4917_p4 = scmp.lt.s32.totalorder %s42_s18, %s42_s18 }
  0x10   :  { %p4913_p3 = scmp.ne.s32.totalorder %s42_s18, %s4912_s28  ;;  %p4918_p5 = scmp.lt.s32.totalorder %s4912_s28, %s4912_s28 }
  0x12   :  { %p4919_p6 = por %p4918_p5, %p4917_p4 }
  0x14   :  { %p4920_p7 = pnand %p4919_p6, %p4913_p3 }
  0x16   :  { %4923 = shalt.err (!%p4920_p7)
}
  0x17   :  { %44 = dma.hbm_to_vmem [thread:$0]  %s5542_s1, 128, %s42_s18, [#allocation6]  }
  0x18   :  { %s4924_s14 = scalar_lea.hbm %s5544_s3, 64 }
  0x19   :  { %p4925_p8 = scmp.ne.s32.totalorder %s5544_s3, %s4924_s14  ;;  %p4928_p9 = scmp.lt.u32.totalorder %s4924_s14, %s5544_s3 }
  0x1b   :  { %p4930_p10 = pnand %p4928_p9, %p4925_p8 }
  0x1d   :  { %4933 = shalt.err (!%p4930_p10)
}
  0x1e   :  { %s4934_s21 = scalar_lea.vmem %s64_s20, 64  ;;  %p4939_p12 = scmp.lt.s32.totalorder %s64_s20, %s64_s20 }
  0x1f   :  { %p4935_p11 = scmp.ne.s32.totalorder %s64_s20, %s4934_s21  ;;  %p4940_p13 = scmp.lt.s32.totalorder %s4934_s21, %s4934_s21 }
  0x21   :  { %p4941_p0 = por %p4940_p13, %p4939_p12 }
  0x23   :  { %p4942_p1 = pnand %p4941_p0, %p4935_p11 }
  0x25   :  { %4945 = shalt.err (!%p4942_p1)
}
  0x26   :  { %66 = dma.hbm_to_vmem [thread:$0]  %s5544_s3, 64, %s64_s20, [#allocation9]  }
  0x27   :  { %s5184_s22 = smov [#allocation11]   ;;  %s5185_s24 = smov [#allocation14]  }
  0x28   :  { %s85_s23 = sshll.u32 %s5184_s22, 4  ;;  %s107_s25 = sshll.u32 %s5185_s24, 4  ;;  %s86_s23 = int_to_ptr.vmem [resolvable:$true] %s85_s23  ;;  %s108_s25 = int_to_ptr.vmem [resolvable:$true] %s107_s25 }
  0x29   :  { %s4946_s28 = scalar_lea.hbm %s5546_s5, 16 }
  0x2a   :  { %p4947_p2 = scmp.ne.s32.totalorder %s5546_s5, %s4946_s28  ;;  %p4950_p3 = scmp.lt.u32.totalorder %s4946_s28, %s5546_s5 }
  0x2c   :  { %p4952_p4 = pnand %p4950_p3, %p4947_p2 }
  0x2e   :  { %4955 = shalt.err (!%p4952_p4)
}
  0x2f   :  { %s4956_s3 = scalar_lea.vmem %s86_s23, 16  ;;  %s4960_s20 = scalar_lea.vmem %s86_s23, 32 }
  0x30   :  { %p4957_p5 = scmp.ne.s32.totalorder %s86_s23, %s4956_s3  ;;  %p4961_p6 = scmp.lt.s32.totalorder %s86_s23, %s86_s23 }
  0x31   :  { %p4962_p7 = scmp.lt.s32.totalorder %s4960_s20, %s4956_s3 }
  0x33   :  { %p4963_p8 = por %p4962_p7, %p4961_p6 }
  0x35   :  { %p4964_p9 = pnand %p4963_p8, %p4957_p5 }
  0x37   :  { %4967 = shalt.err (!%p4964_p9)
}
  0x38   :  { %88 = dma.hbm_to_vmem [thread:$0]  %s5546_s5, 16, %s86_s23, [#allocation12]  }
  0x39   :  { %s4968_s19 = scalar_lea.hbm %s5548_s7, 64 }
  0x3a   :  { %p4969_p10 = scmp.ne.s32.totalorder %s5548_s7, %s4968_s19  ;;  %p4972_p11 = scmp.lt.u32.totalorder %s4968_s19, %s5548_s7 }
  0x3c   :  { %p4974_p12 = pnand %p4972_p11, %p4969_p10 }
  0x3e   :  { %4977 = shalt.err (!%p4974_p12)
}
  0x3f   :  { %s4978_s24 = scalar_lea.vmem %s108_s25, 64  ;;  %p4983_p0 = scmp.lt.s32.totalorder %s108_s25, %s108_s25 }
  0x40   :  { %p4979_p13 = scmp.ne.s32.totalorder %s108_s25, %s4978_s24  ;;  %p4984_p1 = scmp.lt.s32.totalorder %s4978_s24, %s4978_s24 }
  0x42   :  { %p4985_p2 = por %p4984_p1, %p4983_p0 }
  0x44   :  { %p4986_p3 = pnand %p4985_p2, %p4979_p13 }
  0x46   :  { %4989 = shalt.err (!%p4986_p3)
}
  0x47   :  { %110 = dma.hbm_to_vmem [thread:$0]  %s5548_s7, 64, %s108_s25, [#allocation15]  }
  0x48   :  { %s5186_s26 = smov [#allocation2]   ;;  %s5187_s28 = smov [#allocation7]  }
  0x49   :  { %s31_s27 = sshll.u32 %s5186_s26, 4  ;;  %s50_s29 = sshll.u32 %s5187_s28, 4  ;;  %s32_s27 = int_to_ptr.vmem [resolvable:$true] %s31_s27  ;;  %s5310_s29 = int_to_ptr.vmem [resolvable:$true] %s50_s29 }
  0x4a   :  { %s4990_s13 = scalar_lea.hbm %s5541_s0, 448 }
  0x4b   :  { %p4991_p4 = scmp.ne.s32.totalorder %s5541_s0, %s4990_s13  ;;  %p4994_p5 = scmp.lt.u32.totalorder %s4990_s13, %s5541_s0 }
  0x4d   :  { %p4996_p6 = pnand %p4994_p5, %p4991_p4 }
  0x4f   :  { %4999 = shalt.err (!%p4996_p6)
}
  0x50   :  { %s5000_s7 = scalar_lea.vmem %s32_s27, 448  ;;  %p5005_p8 = scmp.lt.s32.totalorder %s32_s27, %s32_s27 }
  0x51   :  { %p5001_p7 = scmp.ne.s32.totalorder %s32_s27, %s5000_s7  ;;  %p5006_p9 = scmp.lt.s32.totalorder %s5000_s7, %s5000_s7 }
  0x53   :  { %p5007_p10 = por %p5006_p9, %p5005_p8 }
  0x55   :  { %p5008_p11 = pnand %p5007_p10, %p5001_p7 }
  0x57   :  { %5011 = shalt.err (!%p5008_p11)
}
  0x58   :  { %34 = dma.hbm_to_vmem [thread:$0]  %s5541_s0, 448, %s32_s27, [#allocation3]  }
  0x59   :  { %s5012_s21 = scalar_lea.hbm %s5543_s2, 25088 }
  0x5a   :  { %p5013_p12 = scmp.ne.s32.totalorder %s5543_s2, %s5012_s21  ;;  %p5016_p13 = scmp.lt.u32.totalorder %s5012_s21, %s5543_s2 }
  0x5c   :  { %p5018_p0 = pnand %p5016_p13, %p5013_p12 }
  0x5e   :  { %5021 = shalt.err (!%p5018_p0)
}
  0x5f   :  { %s5022_s5 = scalar_lea.vmem %s5310_s29, 25088  ;;  %p5027_p2 = scmp.lt.s32.totalorder %s5310_s29, %s5310_s29 }
  0x60   :  { %p5023_p1 = scmp.ne.s32.totalorder %s5310_s29, %s5022_s5  ;;  %p5028_p3 = scmp.lt.s32.totalorder %s5022_s5, %s5022_s5 }
  0x62   :  { %p5029_p4 = por %p5028_p3, %p5027_p2 }
  0x64   :  { %p5030_p5 = pnand %p5029_p4, %p5023_p1 }
  0x66   :  { %5033 = shalt.err (!%p5030_p5)
}
  0x67   :  { %s5188_s0 = smov 256   ;;  %s5189_s23 = smov 16  }
  0x68   :  { %56 = dma.hbm_to_vmem [thread:$0]  %s5543_s2, 25088, %s5310_s29, [#allocation6], %s5188_s0, %s5188_s0, %s5189_s23  }
  0x69   :  { %s5190_s28 = smov [#allocation10]   ;;  %s5034_s3 = scalar_lea.hbm %s5545_s4, 3200 }
  0x6a   :  { %s72_s30 = sshll.u32 %s5190_s28, 4  ;;  %p5035_p6 = scmp.ne.s32.totalorder %s5545_s4, %s5034_s3  ;;  %s73_s30 = int_to_ptr.vmem [resolvable:$true] %s72_s30 }
  0x6b   :  { %p5038_p7 = scmp.lt.u32.totalorder %s5034_s3, %s5545_s4 }
  0x6d   :  { %p5040_p8 = pnand %p5038_p7, %p5035_p6 }
  0x6f   :  { %5043 = shalt.err (!%p5040_p8)
}
  0x70   :  { %s5044_s25 = scalar_lea.vmem %s73_s30, 3200  ;;  %p5049_p10 = scmp.lt.s32.totalorder %s73_s30, %s73_s30 }
  0x71   :  { %p5045_p9 = scmp.ne.s32.totalorder %s73_s30, %s5044_s25  ;;  %p5050_p11 = scmp.lt.s32.totalorder %s5044_s25, %s5044_s25 }
  0x73   :  { %p5051_p12 = por %p5050_p11, %p5049_p10 }
  0x75   :  { %p5052_p13 = pnand %p5051_p12, %p5045_p9 }
  0x77   :  { %5055 = shalt.err (!%p5052_p13)
}
  0x78   :  { %s5191_s2 = smov 64   ;;  %s5192_s29 = smov 4  }
  0x79   :  { %78 = dma.hbm_to_vmem [thread:$0]  %s5545_s4, 3200, %s73_s30, [#allocation9], %s5191_s2, %s5191_s2, %s5192_s29  }
  0x7a   :  { %s5193_s19 = smov [#allocation13]   ;;  %s5194_s1 = smov [#allocation16]  }
  0x7b   :  { %s94_s21 = sshll.u32 %s5193_s19, 4  ;;  %s116_s18 = sshll.u32 %s5194_s1, 4  ;;  %s95_s21 = int_to_ptr.vmem [resolvable:$true] %s94_s21  ;;  %s117_s18 = int_to_ptr.vmem [resolvable:$true] %s116_s18 }
  0x7c   :  { %s5056_s5 = scalar_lea.hbm %s5547_s6, 768 }
  0x7d   :  { %p5057_p0 = scmp.ne.s32.totalorder %s5547_s6, %s5056_s5  ;;  %p5060_p1 = scmp.lt.u32.totalorder %s5056_s5, %s5547_s6 }
  0x7f   :  { %p5062_p2 = pnand %p5060_p1, %p5057_p0 }
  0x81   :  { %5065 = shalt.err (!%p5062_p2)
}
  0x82   :  { %s5066_s4 = scalar_lea.vmem %s95_s21, 768  ;;  %p5071_p4 = scmp.lt.s32.totalorder %s95_s21, %s95_s21 }
  0x83   :  { %p5067_p3 = scmp.ne.s32.totalorder %s95_s21, %s5066_s4  ;;  %p5072_p5 = scmp.lt.s32.totalorder %s5066_s4, %s5066_s4 }
  0x85   :  { %p5073_p6 = por %p5072_p5, %p5071_p4 }
  0x87   :  { %p5074_p7 = pnand %p5073_p6, %p5067_p3 }
  0x89   :  { %5077 = shalt.err (!%p5074_p7)
}
  0x8a   :  { %100 = dma.hbm_to_vmem [thread:$0]  %s5547_s6, 768, %s95_s21, [#allocation12], %s5188_s0, %s5188_s0, %s5189_s23  }
  0x8b   :  { %s5078_s14 = scalar_lea.hbm %s5549_s8, 22400 }
  0x8c   :  { %p5079_p8 = scmp.ne.s32.totalorder %s5549_s8, %s5078_s14  ;;  %p5082_p9 = scmp.lt.u32.totalorder %s5078_s14, %s5549_s8 }
  0x8e   :  { %p5084_p10 = pnand %p5082_p9, %p5079_p8 }
  0x90   :  { %5087 = shalt.err (!%p5084_p10)
}
  0x91   :  { %s5088_s29 = scalar_lea.vmem %s117_s18, 22400  ;;  %p5093_p12 = scmp.lt.s32.totalorder %s117_s18, %s117_s18 }
  0x92   :  { %p5089_p11 = scmp.ne.s32.totalorder %s117_s18, %s5088_s29  ;;  %p5094_p13 = scmp.lt.s32.totalorder %s5088_s29, %s5088_s29 }
  0x94   :  { %p5095_p0 = por %p5094_p13, %p5093_p12 }
  0x96   :  { %p5096_p1 = pnand %p5095_p0, %p5089_p11 }
  0x98   :  { %5099 = shalt.err (!%p5096_p1)
}
  0x99   :  { %s5195_s6 = smov 448   ;;  %s5196_s0 = smov 28  }
  0x9a   :  { %122 = dma.hbm_to_vmem [thread:$0]  %s5549_s8, 22400, %s117_s18, [#allocation15], %s5195_s6, %s5195_s6, %s5196_s0  }
  0x9b   :  { %s5197_s17 = smov [#allocation17]   ;;  %s5100_s22 = scalar_lea.hbm %s5550_s9, 112 }
  0x9c   :  { %s129_s19 = sshll.u32 %s5197_s17, 4  ;;  %p5101_p2 = scmp.ne.s32.totalorder %s5550_s9, %s5100_s22  ;;  %s130_s19 = int_to_ptr.vmem [resolvable:$true] %s129_s19 }
  0x9d   :  { %p5104_p3 = scmp.lt.u32.totalorder %s5100_s22, %s5550_s9 }
  0x9f   :  { %p5106_p4 = pnand %p5104_p3, %p5101_p2 }
  0xa1   :  { %5109 = shalt.err (!%p5106_p4)
}
  0xa2   :  { %s5110_s28 = scalar_lea.vmem %s130_s19, 112  ;;  %s5114_s8 = scalar_lea.vmem %s130_s19, 128 }
  0xa3   :  { %p5111_p5 = scmp.ne.s32.totalorder %s130_s19, %s5110_s28  ;;  %p5115_p6 = scmp.lt.s32.totalorder %s130_s19, %s130_s19 }
  0xa4   :  { %p5116_p7 = scmp.lt.s32.totalorder %s5114_s8, %s5110_s28 }
  0xa6   :  { %p5117_p8 = por %p5116_p7, %p5115_p6 }
  0xa8   :  { %p5118_p9 = pnand %p5117_p8, %p5111_p5 }
  0xaa   :  { %5121 = shalt.err (!%p5118_p9)
}
  0xab   :  { %132 = dma.hbm_to_vmem [thread:$0]  %s5550_s9, 112, %s130_s19, [#allocation18]  }
  0xac   :  { %5166 = dma.done.wait [#allocation3], 448  }
  0xad   :  { %5167 = vsyncadd [#allocation3], 4294966848 }
  0xae   :  { %5168 = dma.done.wait [#allocation6], 25216  }
  0xaf   :  { %5169 = vsyncadd [#allocation6], 4294942080 }
  0xb0   :  { %5170 = dma.done.wait [#allocation9], 3264  }
  0xb1   :  { %5171 = vsyncadd [#allocation9], 4294964032 }
  0xb2   :  { %5172 = dma.done.wait [#allocation12], 784  }
  0xb3   :  { %5173 = vsyncadd [#allocation12], 4294966512 }
  0xb4   :  { %5174 = dma.done.wait [#allocation15], 22464  }
  0xb5   :  { %5175 = vsyncadd [#allocation15], 4294944832 }
  0xb6   :  { %5176 = dma.done.wait [#allocation18], 112  }
  0xb7   :  { %5177 = vsyncadd [#allocation18], 4294967184  ;;  %v5198_v0 = vmov 0   ;;  %v4285_v1 = vld [vmem:[#allocation7 + $0x4] ss:$16 sps:$4 sm:$0xff]   ;;  %vm1390_vm0 = vcmask 130048  }
  0xb8   :  { %1549 = vmatprep.mubr.bf16.mxu1 %v5198_v0  ;;  %v4287_v2 = vld [vmem:[#allocation7 + $0x604] ss:$16 sps:$4 sm:$0xff]   ;;  %1394 = vmatprep.subr.bf16.mxu0 %v4285_v1  ;;  %v4289_v3 = vld [vmem:[#allocation7] ss:$16 sps:$4 sm:$0xff]   ;;  %v4294_v7 = vld [vmem:[#allocation7 + $0x8] ss:$16 sps:$4 sm:$0xff]  }
  0xb9   :  { %v4290_v4 = vld [vmem:[#allocation7 + $0x600] ss:$16 sps:$4 sm:$0xff]   ;;  %1517 = vmatprep.subr.bf16.mxu1 %v4287_v2  ;;  %v4291_v5 = vld [vmem:[#allocation7 + $0x24] ss:$16 sps:$4 sm:$0xff]   ;;  %1395 = vmatpush1.bf16.msra.mxu0 %v4289_v3  ;;  %v4296_v8 = vld [vmem:[#allocation7 + $0xc] ss:$16 sps:$4 sm:$0xff]  }
  0xba   :  { %1518 = vmatpush1.bf16.msra.mxu1 %v4290_v4  ;;  %v4293_v6 = vld [vmem:[#allocation2 + $0x18] ss:$0 sps:$4 sm:$0xff]   ;;  %1396 = vmatprep.subr.bf16.mxu0 %v4291_v5  ;;  %v4297_v9 = vld [vmem:[#allocation7 + $0x20] ss:$16 sps:$4 sm:$0xff]   ;;  %v4300_v11 = vld [vmem:[#allocation7 + $0x28] ss:$16 sps:$4 sm:$0xff]  }
  0xbb   :  { %v4298_v10 = vld [vmem:[#allocation7 + $0x44] ss:$16 sps:$4 sm:$0xff]   ;;  %1558 = vmatprep.subr.bf16.mxu1 %v4296_v8  ;;  %v4302_v12 = vld [vmem:[#allocation7 + $0x2c] ss:$16 sps:$4 sm:$0xff]   ;;  %v4303_v13 = vld [vmem:[#allocation7 + $0x40] ss:$16 sps:$4 sm:$0xff]  }
  0xbc   :  { %v4304_v14 = vld [vmem:[#allocation7 + $0x64] ss:$16 sps:$4 sm:$0xff]   ;;  %v4308_v15 = vld [vmem:[#allocation7 + $0x4c] ss:$16 sps:$4 sm:$0xff]   ;;  %v4306_v16 = vld [vmem:[#allocation7 + $0x48] ss:$16 sps:$4 sm:$0xff]  }
  0xbd   :  { %3950 = vmatmul.mubr.msk.bf16.vlgmr.msra.gmra.mrb[0].mxu1 %vm1390_vm0, %v4293_v6  ;;  %1397 = vmatpush1.bf16.msra.mxu0 %v4297_v9  ;;  %v4309_v17 = vld [vmem:[#allocation7 + $0x60] ss:$16 sps:$4 sm:$0xff]   ;;  %v4310_v18 = vld [vmem:[#allocation7 + $0x84] ss:$16 sps:$4 sm:$0xff]   ;;  %v4314_v19 = vld [vmem:[#allocation7 + $0x6c] ss:$16 sps:$4 sm:$0xff]  }
  0xbe   :  { %1559 = vmatpush1.bf16.msra.mxu1 %v4294_v7  ;;  %1398 = vmatprep.subr.bf16.mxu0 %v4298_v10  ;;  %v4312_v20 = vld [vmem:[#allocation7 + $0x68] ss:$16 sps:$4 sm:$0xff]   ;;  %v4315_v21 = vld [vmem:[#allocation7 + $0x80] ss:$16 sps:$4 sm:$0xff]   ;;  %v4316_v22 = vld [vmem:[#allocation7 + $0xa4] ss:$16 sps:$4 sm:$0xff]  }
  0xbf   :  { %1560 = vmatprep.subr.bf16.mxu1 %v4302_v12  ;;  %v4320_v23 = vld [vmem:[#allocation7 + $0x8c] ss:$16 sps:$4 sm:$0xff]   ;;  %v4318_v24 = vld [vmem:[#allocation7 + $0x88] ss:$16 sps:$4 sm:$0xff]   ;;  %v4321_v25 = vld [vmem:[#allocation7 + $0xa0] ss:$16 sps:$4 sm:$0xff]  }
  0xc0   :  { %v4322_v26 = vld [vmem:[#allocation7 + $0xc4] ss:$16 sps:$4 sm:$0xff]   ;;  %v4326_v27 = vld [vmem:[#allocation7 + $0xac] ss:$16 sps:$4 sm:$0xff]   ;;  %v4324_v28 = vld [vmem:[#allocation7 + $0xa8] ss:$16 sps:$4 sm:$0xff]  }
  0xc1   :  { %1399 = vmatpush1.bf16.msra.mxu0 %v4303_v13  ;;  %v4327_v29 = vld [vmem:[#allocation7 + $0xc0] ss:$16 sps:$4 sm:$0xff]   ;;  %v4328_v30 = vld [vmem:[#allocation7 + $0xe4] ss:$16 sps:$4 sm:$0xff]   ;;  %v4332_v31 = vld [vmem:[#allocation7 + $0xcc] ss:$16 sps:$4 sm:$0xff]  }
  0xc2   :  { %1561 = vmatpush1.bf16.msra.mxu1 %v4300_v11  ;;  %1400 = vmatprep.subr.bf16.mxu0 %v4304_v14  ;;  %v4330_v32 = vld [vmem:[#allocation7 + $0xc8] ss:$16 sps:$4 sm:$0xff]   ;;  %v4333_v33 = vld [vmem:[#allocation7 + $0xe0] ss:$16 sps:$4 sm:$0xff]   ;;  %v4334_v34 = vld [vmem:[#allocation7 + $0x104] ss:$16 sps:$4 sm:$0xff]  }
  0xc3   :  { %1562 = vmatprep.subr.bf16.mxu1 %v4308_v15  ;;  %v4338_v35 = vld [vmem:[#allocation7 + $0xec] ss:$16 sps:$4 sm:$0xff]   ;;  %v4336_v36 = vld [vmem:[#allocation7 + $0xe8] ss:$16 sps:$4 sm:$0xff]   ;;  %v4339_v37 = vld [vmem:[#allocation7 + $0x100] ss:$16 sps:$4 sm:$0xff]  }
  0xc4   :  { %v4340_v38 = vld [vmem:[#allocation7 + $0x124] ss:$16 sps:$4 sm:$0xff]   ;;  %v4344_v39 = vld [vmem:[#allocation7 + $0x10c] ss:$16 sps:$4 sm:$0xff]   ;;  %v4342_v40 = vld [vmem:[#allocation7 + $0x108] ss:$16 sps:$4 sm:$0xff]  }
  0xc5   :  { %1401 = vmatpush1.bf16.msra.mxu0 %v4309_v17  ;;  %v4345_v41 = vld [vmem:[#allocation7 + $0x120] ss:$16 sps:$4 sm:$0xff]   ;;  %v4346_v42 = vld [vmem:[#allocation7 + $0x144] ss:$16 sps:$4 sm:$0xff]   ;;  %v4350_v43 = vld [vmem:[#allocation7 + $0x12c] ss:$16 sps:$4 sm:$0xff]  }
  0xc6   :  { %1563 = vmatpush1.bf16.msra.mxu1 %v4306_v16  ;;  %1402 = vmatprep.subr.bf16.mxu0 %v4310_v18  ;;  %v4348_v44 = vld [vmem:[#allocation7 + $0x128] ss:$16 sps:$4 sm:$0xff]   ;;  %v4351_v45 = vld [vmem:[#allocation7 + $0x140] ss:$16 sps:$4 sm:$0xff]   ;;  %v4352_v46 = vld [vmem:[#allocation7 + $0x164] ss:$16 sps:$4 sm:$0xff]  }
  0xc7   :  { %1564 = vmatprep.subr.bf16.mxu1 %v4314_v19  ;;  %v4356_v47 = vld [vmem:[#allocation7 + $0x14c] ss:$16 sps:$4 sm:$0xff]   ;;  %v4354_v48 = vld [vmem:[#allocation7 + $0x148] ss:$16 sps:$4 sm:$0xff]   ;;  %v4357_v50 = vld [vmem:[#allocation7 + $0x160] ss:$16 sps:$4 sm:$0xff]  }
  0xc8   :  { %v164_v49 = vld [vmem:[#allocation2] sm:$0xff]  ;;  %v4358_v51 = vld [vmem:[#allocation7 + $0x184] ss:$16 sps:$4 sm:$0xff]   ;;  %v4360_v54 = vld [vmem:[#allocation7 + $0x168] ss:$16 sps:$4 sm:$0xff]   ;;  %vm3711_vm1 = vcmask 326656  }
  0xc9   :  { %1403 = vmatpush1.bf16.msra.mxu0 %v4315_v21  ;;  %v3748_v52 = vcombine.high %v164_v49, %v164_v49  ;;  %v4362_v53 = vld [vmem:[#allocation7 + $0x16c] ss:$16 sps:$4 sm:$0xff]   ;;  %v4363_v55 = vld [vmem:[#allocation7 + $0x180] ss:$16 sps:$4 sm:$0xff]   ;;  %v4364_v56 = vld [vmem:[#allocation7 + $0x1a4] ss:$16 sps:$4 sm:$0xff]   ;;  %v3747_v7 = vcombine.low %v164_v49, %v164_v49 }
  0xca   :  { %1565 = vmatpush1.bf16.msra.mxu1 %v4312_v20  ;;  %1404 = vmatprep.subr.bf16.mxu0 %v4316_v22  ;;  %v4368_v57 = vld [vmem:[#allocation7 + $0x18c] ss:$16 sps:$4 sm:$0xff]   ;;  %v4366_v58 = vld [vmem:[#allocation7 + $0x188] ss:$16 sps:$4 sm:$0xff]   ;;  %v4369_v59 = vld [vmem:[#allocation7 + $0x1a0] ss:$16 sps:$4 sm:$0xff]  }
  0xcb   :  { %1566 = vmatprep.subr.bf16.mxu1 %v4320_v23  ;;  %1426 = vmatprep.mubr.bf16.mxu0 %v3748_v52  ;;  %v4370_v60 = vld [vmem:[#allocation7 + $0x1c4] ss:$16 sps:$4 sm:$0xff]   ;;  %v4374_v61 = vld [vmem:[#allocation7 + $0x1ac] ss:$16 sps:$4 sm:$0xff]   ;;  %v4372_v62 = vld [vmem:[#allocation7 + $0x1a8] ss:$16 sps:$4 sm:$0xff]  }
  0xcc   :  { %1590 = vmatprep.mubr.bf16.mxu1 %v3748_v52  ;;  %v4375_v63 = vld [vmem:[#allocation7 + $0x1c0] ss:$16 sps:$4 sm:$0xff]   ;;  %v4376_v1 = vld [vmem:[#allocation7 + $0x1e4] ss:$16 sps:$4 sm:$0xff]   ;;  %v4380_v2 = vld [vmem:[#allocation7 + $0x1cc] ss:$16 sps:$4 sm:$0xff]  }
  0xcd   :  { %1405 = vmatpush1.bf16.msra.mxu0 %v4321_v25  ;;  %v4378_v3 = vld [vmem:[#allocation7 + $0x1c8] ss:$16 sps:$4 sm:$0xff]   ;;  %v4381_v4 = vld [vmem:[#allocation7 + $0x1e0] ss:$16 sps:$4 sm:$0xff]   ;;  %v4386_v5 = vld [vmem:[#allocation7 + $0x204] ss:$16 sps:$4 sm:$0xff]  }
  0xce   :  { %1567 = vmatpush1.bf16.msra.mxu1 %v4318_v24  ;;  %1406 = vmatprep.subr.bf16.mxu0 %v4322_v26  ;;  %v4389_v6 = vld [vmem:[#allocation7 + $0x1ec] ss:$16 sps:$4 sm:$0xff]   ;;  %v4384_v8 = vld [vmem:[#allocation7 + $0x200] ss:$16 sps:$4 sm:$0xff]   ;;  %v4387_v9 = vld [vmem:[#allocation7 + $0x1e8] ss:$16 sps:$4 sm:$0xff]  }
  0xcf   :  { %1568 = vmatprep.subr.bf16.mxu1 %v4326_v27  ;;  %v4392_v10 = vld [vmem:[#allocation7 + $0x224] ss:$16 sps:$4 sm:$0xff]   ;;  %v4395_v11 = vld [vmem:[#allocation7 + $0x20c] ss:$16 sps:$4 sm:$0xff]   ;;  %v4390_v12 = vld [vmem:[#allocation7 + $0x220] ss:$16 sps:$4 sm:$0xff]  }
  0xd0   :  { %v4393_v13 = vld [vmem:[#allocation7 + $0x208] ss:$16 sps:$4 sm:$0xff]   ;;  %v4398_v14 = vld [vmem:[#allocation7 + $0x244] ss:$16 sps:$4 sm:$0xff]   ;;  %v4401_v15 = vld [vmem:[#allocation7 + $0x22c] ss:$16 sps:$4 sm:$0xff]  }
  0xd1   :  { %1407 = vmatpush1.bf16.msra.mxu0 %v4327_v29  ;;  %v4396_v16 = vld [vmem:[#allocation7 + $0x240] ss:$16 sps:$4 sm:$0xff]   ;;  %v4399_v17 = vld [vmem:[#allocation7 + $0x228] ss:$16 sps:$4 sm:$0xff]   ;;  %v4404_v18 = vld [vmem:[#allocation7 + $0x264] ss:$16 sps:$4 sm:$0xff]  }
  0xd2   :  { %1569 = vmatpush1.bf16.msra.mxu1 %v4324_v28  ;;  %1408 = vmatprep.subr.bf16.mxu0 %v4328_v30  ;;  %v4407_v19 = vld [vmem:[#allocation7 + $0x24c] ss:$16 sps:$4 sm:$0xff]   ;;  %v4402_v20 = vld [vmem:[#allocation7 + $0x260] ss:$16 sps:$4 sm:$0xff]   ;;  %v4405_v21 = vld [vmem:[#allocation7 + $0x248] ss:$16 sps:$4 sm:$0xff]  }
  0xd3   :  { %1570 = vmatprep.subr.bf16.mxu1 %v4332_v31  ;;  %v4410_v22 = vld [vmem:[#allocation7 + $0x284] ss:$16 sps:$4 sm:$0xff]   ;;  %v4413_v23 = vld [vmem:[#allocation7 + $0x26c] ss:$16 sps:$4 sm:$0xff]   ;;  %v4408_v24 = vld [vmem:[#allocation7 + $0x280] ss:$16 sps:$4 sm:$0xff]  }
  0xd4   :  { %v4411_v25 = vld [vmem:[#allocation7 + $0x268] ss:$16 sps:$4 sm:$0xff]   ;;  %v4416_v26 = vld [vmem:[#allocation7 + $0x2a4] ss:$16 sps:$4 sm:$0xff]   ;;  %v4419_v27 = vld [vmem:[#allocation7 + $0x28c] ss:$16 sps:$4 sm:$0xff]  }
  0xd5   :  { %1409 = vmatpush1.bf16.msra.mxu0 %v4333_v33  ;;  %v4414_v28 = vld [vmem:[#allocation7 + $0x2a0] ss:$16 sps:$4 sm:$0xff]   ;;  %v4417_v29 = vld [vmem:[#allocation7 + $0x288] ss:$16 sps:$4 sm:$0xff]   ;;  %v4422_v30 = vld [vmem:[#allocation7 + $0x2c4] ss:$16 sps:$4 sm:$0xff]  }
  0xd6   :  { %1571 = vmatpush1.bf16.msra.mxu1 %v4330_v32  ;;  %1410 = vmatprep.subr.bf16.mxu0 %v4334_v34  ;;  %v4425_v31 = vld [vmem:[#allocation7 + $0x2ac] ss:$16 sps:$4 sm:$0xff]   ;;  %v5397_v32 = vld [vmem:[#allocation2 + $0x8] sm:$0xff]  ;;  %v4420_v33 = vld [vmem:[#allocation7 + $0x2c0] ss:$16 sps:$4 sm:$0xff]   ;;  %vm2093_vm2 = vcmask 1041408  }
  0xd7   :  { %1572 = vmatprep.subr.bf16.mxu1 %v4338_v35  ;;  %v4423_v34 = vld [vmem:[#allocation7 + $0x2a8] ss:$16 sps:$4 sm:$0xff]   ;;  %v3750_v35 = vcombine.high %v5397_v32, %v5397_v32  ;;  %v4449_v49 = vld [vmem:[#allocation7 + $0x32c] ss:$16 sps:$4 sm:$0xff]   ;;  %v4452_v52 = vld [vmem:[#allocation7 + $0x364] ss:$16 sps:$4 sm:$0xff]  }
  0xd8   :  { %s5199_s9 = smov 108   ;;  %vm2089_vm3 = vcmask 162816   ;;  %s5200_s4 = smov [#allocation20]  }
  0xd9   :  { %1411 = vmatpush1.bf16.msra.mxu0 %v4339_v37  ;;  %v4431_v37 = vld [vmem:[#allocation7 + $0x2cc] ss:$16 sps:$4 sm:$0xff]   ;;  %s3729_s30 = sshll.u32 %s5200_s4, 4  ;;  %s3730_s30 = int_to_ptr.vmem [resolvable:$true] %s3729_s30 }
  0xda   :  { %1573 = vmatpush1.bf16.msra.mxu1 %v4336_v36  ;;  %1412 = vmatprep.subr.bf16.mxu0 %v4340_v38  ;;  %v4428_v36 = vld [vmem:[#allocation7 + $0x2e4] ss:$16 sps:$4 sm:$0xff]   ;;  %v4426_v38 = vld [vmem:[#allocation7 + $0x2e0] ss:$16 sps:$4 sm:$0xff]   ;;  %s5122_s13 = scalar_lea.vmem %s3730_s30, 128  ;;  %p5127_p11 = scmp.lt.s32.totalorder %s3730_s30, %s3730_s30 }
  0xdb   :  { %1574 = vmatprep.subr.bf16.mxu1 %v4344_v39  ;;  %v4429_v39 = vld [vmem:[#allocation7 + $0x2c8] ss:$16 sps:$4 sm:$0xff]   ;;  %p5123_p10 = scmp.ne.s32.totalorder %s3730_s30, %s5122_s13  ;;  %p5128_p12 = scmp.lt.s32.totalorder %s5122_s13, %s5122_s13 }
  0xdd   :  { %1413 = vmatpush1.bf16.msra.mxu0 %v4345_v41  ;;  %v4437_v41 = vld [vmem:[#allocation7 + $0x2ec] ss:$16 sps:$4 sm:$0xff]   ;;  %p5129_p13 = por %p5128_p12, %p5127_p11 }
  0xde   :  { %1575 = vmatpush1.bf16.msra.mxu1 %v4342_v40  ;;  %1414 = vmatprep.subr.bf16.mxu0 %v4346_v42  ;;  %v4434_v40 = vld [vmem:[#allocation7 + $0x304] ss:$16 sps:$4 sm:$0xff]   ;;  %v4432_v42 = vld [vmem:[#allocation7 + $0x300] ss:$16 sps:$4 sm:$0xff]  }
  0xdf   :  { %1576 = vmatprep.subr.bf16.mxu1 %v4350_v43  ;;  %v4435_v43 = vld [vmem:[#allocation7 + $0x2e8] ss:$16 sps:$4 sm:$0xff]   ;;  %p5130_p0 = pnand %p5129_p13, %p5123_p10 }
  0xe1   :  { %1415 = vmatpush1.bf16.msra.mxu0 %v4351_v45  ;;  %v4443_v45 = vld [vmem:[#allocation7 + $0x30c] ss:$16 sps:$4 sm:$0xff]  }
  0xe2   :  { %1577 = vmatpush1.bf16.msra.mxu1 %v4348_v44  ;;  %1416 = vmatprep.subr.bf16.mxu0 %v4352_v46  ;;  %v4440_v44 = vld [vmem:[#allocation7 + $0x324] ss:$16 sps:$4 sm:$0xff]   ;;  %v4438_v46 = vld [vmem:[#allocation7 + $0x320] ss:$16 sps:$4 sm:$0xff]  }
  0xe3   :  { %1578 = vmatprep.subr.bf16.mxu1 %v4356_v47  ;;  %v4441_v47 = vld [vmem:[#allocation7 + $0x308] ss:$16 sps:$4 sm:$0xff]  }
  0xe5   :  { %1417 = vmatpush1.bf16.msra.mxu0 %v4357_v50  ;;  %v4444_v50 = vld [vmem:[#allocation7 + $0x340] ss:$16 sps:$4 sm:$0xff]  }
  0xe6   :  { %1579 = vmatpush1.bf16.msra.mxu1 %v4354_v48  ;;  %1418 = vmatprep.subr.bf16.mxu0 %v4358_v51  ;;  %v4446_v48 = vld [vmem:[#allocation7 + $0x344] ss:$16 sps:$4 sm:$0xff]   ;;  %v4447_v51 = vld [vmem:[#allocation7 + $0x328] ss:$16 sps:$4 sm:$0xff]  }
  0xe7   :  { %1580 = vmatprep.subr.bf16.mxu1 %v4362_v53  ;;  %v4455_v53 = vld [vmem:[#allocation7 + $0x34c] ss:$16 sps:$4 sm:$0xff]  }
  0xe9   :  { %1419 = vmatpush1.bf16.msra.mxu0 %v4363_v55  ;;  %v4453_v55 = vld [vmem:[#allocation7 + $0x348] ss:$16 sps:$4 sm:$0xff]  }
  0xea   :  { %1581 = vmatpush1.bf16.msra.mxu1 %v4360_v54  ;;  %1420 = vmatprep.subr.bf16.mxu0 %v4364_v56  ;;  %v4450_v54 = vld [vmem:[#allocation7 + $0x360] ss:$16 sps:$4 sm:$0xff]   ;;  %v4458_v56 = vld [vmem:[#allocation7 + $0x384] ss:$16 sps:$4 sm:$0xff]  }
  0xeb   :  { %1582 = vmatprep.subr.bf16.mxu1 %v4368_v57  ;;  %v4461_v57 = vld [vmem:[#allocation7 + $0x36c] ss:$16 sps:$4 sm:$0xff]  }
  0xed   :  { %1421 = vmatpush1.bf16.msra.mxu0 %v4369_v59  ;;  %v4459_v59 = vld [vmem:[#allocation7 + $0x368] ss:$16 sps:$4 sm:$0xff]  }
  0xee   :  { %1583 = vmatpush1.bf16.msra.mxu1 %v4366_v58  ;;  %1422 = vmatprep.subr.bf16.mxu0 %v4370_v60  ;;  %v4456_v58 = vld [vmem:[#allocation7 + $0x380] ss:$16 sps:$4 sm:$0xff]   ;;  %v4464_v60 = vld [vmem:[#allocation7 + $0x3a4] ss:$16 sps:$4 sm:$0xff]  }
  0xef   :  { %1584 = vmatprep.subr.bf16.mxu1 %v4374_v61  ;;  %v4467_v61 = vld [vmem:[#allocation7 + $0x38c] ss:$16 sps:$4 sm:$0xff]  }
  0xf1   :  { %1423 = vmatpush1.bf16.msra.mxu0 %v4375_v63  ;;  %v4465_v63 = vld [vmem:[#allocation7 + $0x388] ss:$16 sps:$4 sm:$0xff]  }
  0xf2   :  { %1585 = vmatpush1.bf16.msra.mxu1 %v4372_v62  ;;  %1424 = vmatprep.subr.bf16.mxu0 %v4376_v1  ;;  %v4462_v62 = vld [vmem:[#allocation7 + $0x3a0] ss:$16 sps:$4 sm:$0xff]   ;;  %v4470_v1 = vld [vmem:[#allocation7 + $0x3c4] ss:$16 sps:$4 sm:$0xff]  }
  0xf3   :  { %1586 = vmatprep.subr.bf16.mxu1 %v4380_v2  ;;  %v4473_v2 = vld [vmem:[#allocation7 + $0x3ac] ss:$16 sps:$4 sm:$0xff]  }
  0xf5   :  { %1425 = vmatpush1.bf16.msra.mxu0 %v4381_v4  ;;  %v4471_v4 = vld [vmem:[#allocation7 + $0x3a8] ss:$16 sps:$4 sm:$0xff]  }
  0xf6   :  { %1587 = vmatpush1.bf16.msra.mxu1 %v4378_v3  ;;  %1435 = vmatprep.subr.bf16.mxu0 %v4386_v5  ;;  %v4468_v3 = vld [vmem:[#allocation7 + $0x3c0] ss:$16 sps:$4 sm:$0xff]   ;;  %v4476_v5 = vld [vmem:[#allocation7 + $0x3e4] ss:$16 sps:$4 sm:$0xff]  }
  0xf7   :  { %1588 = vmatprep.subr.bf16.mxu1 %v4389_v6  ;;  %v4479_v6 = vld [vmem:[#allocation7 + $0x3cc] ss:$16 sps:$4 sm:$0xff]  }
  0xf8   :  { %1427 = vmatmul.mubr.bf16.vlgmr.msra.gmra.mrb[0].mxu0 %v3747_v7 }
  0xf9   :  { %1436 = vmatpush1.bf16.msra.mxu0 %v4384_v8  ;;  %1467 = vmatprep.mubr.bf16.mxu0 %v3750_v35  ;;  %v4477_v8 = vld [vmem:[#allocation7 + $0x3c8] ss:$16 sps:$4 sm:$0xff]  }
  0xfa   :  { %1589 = vmatpush1.bf16.msra.mxu1 %v4387_v9  ;;  %1437 = vmatprep.subr.bf16.mxu0 %v4392_v10  ;;  %v4484_v9 = vld [vmem:[#allocation7 + $0x404] ss:$16 sps:$4 sm:$0xff]   ;;  %v4487_v10 = vld [vmem:[#allocation7 + $0x3ec] ss:$16 sps:$4 sm:$0xff]  }
  0xfb   :  { %1599 = vmatprep.subr.bf16.mxu1 %v4395_v11  ;;  %v3749_v11 = vcombine.low %v5397_v32, %v5397_v32  ;;  %v4514_v32 = vld [vmem:[#allocation7 + $0x4a4] ss:$16 sps:$4 sm:$0xff]  }
  0xfd   :  { %1591 = vmatmul.mubr.bf16.vlgmr.msra.gmra.mrb[4].mxu1 %v3747_v7  ;;  %1438 = vmatpush1.bf16.msra.mxu0 %v4390_v12  ;;  %v4474_v7 = vld [vmem:[#allocation7 + $0x3e0] ss:$16 sps:$4 sm:$0xff]  }
  0xfe   :  { %1600 = vmatpush1.bf16.msra.mxu1 %v4393_v13  ;;  %1439 = vmatprep.subr.bf16.mxu0 %v4398_v14  ;;  %v4482_v12 = vld [vmem:[#allocation7 + $0x400] ss:$16 sps:$4 sm:$0xff]   ;;  %v4485_v13 = vld [vmem:[#allocation7 + $0x3e8] ss:$16 sps:$4 sm:$0xff]   ;;  %v4490_v14 = vld [vmem:[#allocation7 + $0x424] ss:$16 sps:$4 sm:$0xff]  }
  0xff   :  { %1601 = vmatprep.subr.bf16.mxu1 %v4401_v15  ;;  %1631 = vmatprep.mubr.bf16.mxu1 %v3750_v35  ;;  %v4493_v15 = vld [vmem:[#allocation7 + $0x40c] ss:$16 sps:$4 sm:$0xff]   ;;  %v4515_v35 = vld [vmem:[#allocation7 + $0x488] ss:$16 sps:$4 sm:$0xff]  }
 0x101   :  { %1440 = vmatpush1.bf16.msra.mxu0 %v4396_v16  ;;  %v5403_v16 = vld [vmem:[#allocation2 + $0x10] sm:$0xff] }
 0x102   :  { %1602 = vmatpush1.bf16.msra.mxu1 %v4399_v17  ;;  %1441 = vmatprep.subr.bf16.mxu0 %v4404_v18  ;;  %v4488_v17 = vld [vmem:[#allocation7 + $0x420] ss:$16 sps:$4 sm:$0xff]   ;;  %v3752_v18 = vcombine.high %v5403_v16, %v5403_v16 }
 0x103   :  { %1603 = vmatprep.subr.bf16.mxu1 %v4407_v19  ;;  %v4491_v19 = vld [vmem:[#allocation7 + $0x408] ss:$16 sps:$4 sm:$0xff]  }
 0x105   :  { %1442 = vmatpush1.bf16.msra.mxu0 %v4402_v20  ;;  %v4496_v20 = vld [vmem:[#allocation7 + $0x444] ss:$16 sps:$4 sm:$0xff]  }
 0x106   :  { %1604 = vmatpush1.bf16.msra.mxu1 %v4405_v21  ;;  %1443 = vmatprep.subr.bf16.mxu0 %v4410_v22  ;;  %v4499_v21 = vld [vmem:[#allocation7 + $0x42c] ss:$16 sps:$4 sm:$0xff]   ;;  %v4494_v22 = vld [vmem:[#allocation7 + $0x440] ss:$16 sps:$4 sm:$0xff]  }
 0x107   :  { %1605 = vmatprep.subr.bf16.mxu1 %v4413_v23  ;;  %v4497_v23 = vld [vmem:[#allocation7 + $0x428] ss:$16 sps:$4 sm:$0xff]  }
 0x109   :  { %1444 = vmatpush1.bf16.msra.mxu0 %v4408_v24  ;;  %v4502_v24 = vld [vmem:[#allocation7 + $0x464] ss:$16 sps:$4 sm:$0xff]  }
 0x10a   :  { %1606 = vmatpush1.bf16.msra.mxu1 %v4411_v25  ;;  %1445 = vmatprep.subr.bf16.mxu0 %v4416_v26  ;;  %v4505_v25 = vld [vmem:[#allocation7 + $0x44c] ss:$16 sps:$4 sm:$0xff]   ;;  %v4500_v26 = vld [vmem:[#allocation7 + $0x460] ss:$16 sps:$4 sm:$0xff]  }
 0x10b   :  { %1607 = vmatprep.subr.bf16.mxu1 %v4419_v27  ;;  %v4503_v27 = vld [vmem:[#allocation7 + $0x448] ss:$16 sps:$4 sm:$0xff]  }
 0x10d   :  { %1446 = vmatpush1.bf16.msra.mxu0 %v4414_v28  ;;  %v4508_v28 = vld [vmem:[#allocation7 + $0x484] ss:$16 sps:$4 sm:$0xff]  }
 0x10e   :  { %1608 = vmatpush1.bf16.msra.mxu1 %v4417_v29  ;;  %1447 = vmatprep.subr.bf16.mxu0 %v4422_v30  ;;  %v4511_v29 = vld [vmem:[#allocation7 + $0x46c] ss:$16 sps:$4 sm:$0xff]   ;;  %v4506_v30 = vld [vmem:[#allocation7 + $0x480] ss:$16 sps:$4 sm:$0xff]  }
 0x10f   :  { %1609 = vmatprep.subr.bf16.mxu1 %v4425_v31  ;;  %v4509_v31 = vld [vmem:[#allocation7 + $0x468] ss:$16 sps:$4 sm:$0xff]  }
 0x111   :  { %1448 = vmatpush1.bf16.msra.mxu0 %v4420_v33  ;;  %v4517_v33 = vld [vmem:[#allocation7 + $0x48c] ss:$16 sps:$4 sm:$0xff]  }
 0x112   :  { %1610 = vmatpush1.bf16.msra.mxu1 %v4423_v34  ;;  %1449 = vmatprep.subr.bf16.mxu0 %v4428_v36  ;;  %v4512_v34 = vld [vmem:[#allocation7 + $0x4a0] ss:$16 sps:$4 sm:$0xff]   ;;  %v4520_v36 = vld [vmem:[#allocation7 + $0x4c4] ss:$16 sps:$4 sm:$0xff]  }
 0x113   :  { %1611 = vmatprep.subr.bf16.mxu1 %v4431_v37  ;;  %v4523_v37 = vld [vmem:[#allocation7 + $0x4ac] ss:$16 sps:$4 sm:$0xff]  }
 0x115   :  { %1450 = vmatpush1.bf16.msra.mxu0 %v4426_v38  ;;  %v4518_v38 = vld [vmem:[#allocation7 + $0x4c0] ss:$16 sps:$4 sm:$0xff]  }
 0x116   :  { %1612 = vmatpush1.bf16.msra.mxu1 %v4429_v39  ;;  %1451 = vmatprep.subr.bf16.mxu0 %v4434_v40  ;;  %v4521_v39 = vld [vmem:[#allocation7 + $0x4a8] ss:$16 sps:$4 sm:$0xff]   ;;  %v4526_v40 = vld [vmem:[#allocation7 + $0x4e4] ss:$16 sps:$4 sm:$0xff]  }
 0x117   :  { %1613 = vmatprep.subr.bf16.mxu1 %v4437_v41  ;;  %v4529_v41 = vld [vmem:[#allocation7 + $0x4cc] ss:$16 sps:$4 sm:$0xff]  }
 0x119   :  { %1452 = vmatpush1.bf16.msra.mxu0 %v4432_v42  ;;  %v4524_v42 = vld [vmem:[#allocation7 + $0x4e0] ss:$16 sps:$4 sm:$0xff]  }
 0x11a   :  { %1614 = vmatpush1.bf16.msra.mxu1 %v4435_v43  ;;  %1453 = vmatprep.subr.bf16.mxu0 %v4440_v44  ;;  %v4527_v43 = vld [vmem:[#allocation7 + $0x4c8] ss:$16 sps:$4 sm:$0xff]   ;;  %v4532_v44 = vld [vmem:[#allocation7 + $0x504] ss:$16 sps:$4 sm:$0xff]  }
 0x11b   :  { %1615 = vmatprep.subr.bf16.mxu1 %v4443_v45  ;;  %v4535_v45 = vld [vmem:[#allocation7 + $0x4ec] ss:$16 sps:$4 sm:$0xff]  }
 0x11d   :  { %1454 = vmatpush1.bf16.msra.mxu0 %v4438_v46  ;;  %v4530_v46 = vld [vmem:[#allocation7 + $0x500] ss:$16 sps:$4 sm:$0xff]  }
 0x11e   :  { %1616 = vmatpush1.bf16.msra.mxu1 %v4441_v47  ;;  %1455 = vmatprep.subr.bf16.mxu0 %v4446_v48  ;;  %v4533_v47 = vld [vmem:[#allocation7 + $0x4e8] ss:$16 sps:$4 sm:$0xff]   ;;  %v4538_v48 = vld [vmem:[#allocation7 + $0x524] ss:$16 sps:$4 sm:$0xff]  }
 0x11f   :  { %1617 = vmatprep.subr.bf16.mxu1 %v4449_v49  ;;  %v4541_v49 = vld [vmem:[#allocation7 + $0x50c] ss:$16 sps:$4 sm:$0xff]  }
 0x121   :  { %1456 = vmatpush1.bf16.msra.mxu0 %v4444_v50  ;;  %v4536_v50 = vld [vmem:[#allocation7 + $0x520] ss:$16 sps:$4 sm:$0xff]  }
 0x122   :  { %1618 = vmatpush1.bf16.msra.mxu1 %v4447_v51  ;;  %1457 = vmatprep.subr.bf16.mxu0 %v4452_v52  ;;  %v4539_v51 = vld [vmem:[#allocation7 + $0x508] ss:$16 sps:$4 sm:$0xff]   ;;  %v4544_v52 = vld [vmem:[#allocation7 + $0x544] ss:$16 sps:$4 sm:$0xff]  }
 0x123   :  { %1619 = vmatprep.subr.bf16.mxu1 %v4455_v53  ;;  %v4547_v53 = vld [vmem:[#allocation7 + $0x52c] ss:$16 sps:$4 sm:$0xff]  }
 0x125   :  { %1458 = vmatpush1.bf16.msra.mxu0 %v4450_v54  ;;  %v4542_v54 = vld [vmem:[#allocation7 + $0x540] ss:$16 sps:$4 sm:$0xff]  }
 0x126   :  { %1620 = vmatpush1.bf16.msra.mxu1 %v4453_v55  ;;  %1459 = vmatprep.subr.bf16.mxu0 %v4458_v56  ;;  %v4545_v55 = vld [vmem:[#allocation7 + $0x528] ss:$16 sps:$4 sm:$0xff]   ;;  %v4550_v56 = vld [vmem:[#allocation7 + $0x564] ss:$16 sps:$4 sm:$0xff]  }
 0x127   :  { %1621 = vmatprep.subr.bf16.mxu1 %v4461_v57  ;;  %v4553_v57 = vld [vmem:[#allocation7 + $0x54c] ss:$16 sps:$4 sm:$0xff]  }
 0x129   :  { %1460 = vmatpush1.bf16.msra.mxu0 %v4456_v58  ;;  %v4548_v58 = vld [vmem:[#allocation7 + $0x560] ss:$16 sps:$4 sm:$0xff]  }
 0x12a   :  { %1622 = vmatpush1.bf16.msra.mxu1 %v4459_v59  ;;  %1461 = vmatprep.subr.bf16.mxu0 %v4464_v60  ;;  %v4551_v59 = vld [vmem:[#allocation7 + $0x548] ss:$16 sps:$4 sm:$0xff]   ;;  %v4556_v60 = vld [vmem:[#allocation7 + $0x584] ss:$16 sps:$4 sm:$0xff]  }
 0x12b   :  { %1623 = vmatprep.subr.bf16.mxu1 %v4467_v61  ;;  %v4559_v61 = vld [vmem:[#allocation7 + $0x56c] ss:$16 sps:$4 sm:$0xff]  }
 0x12d   :  { %1462 = vmatpush1.bf16.msra.mxu0 %v4462_v62  ;;  %v4554_v62 = vld [vmem:[#allocation7 + $0x580] ss:$16 sps:$4 sm:$0xff]  }
 0x12e   :  { %1624 = vmatpush1.bf16.msra.mxu1 %v4465_v63  ;;  %1463 = vmatprep.subr.bf16.mxu0 %v4470_v1  ;;  %v4557_v63 = vld [vmem:[#allocation7 + $0x568] ss:$16 sps:$4 sm:$0xff]   ;;  %v4562_v1 = vld [vmem:[#allocation7 + $0x5a4] ss:$16 sps:$4 sm:$0xff]  }
 0x12f   :  { %1625 = vmatprep.subr.bf16.mxu1 %v4473_v2  ;;  %v4565_v2 = vld [vmem:[#allocation7 + $0x58c] ss:$16 sps:$4 sm:$0xff]  }
 0x131   :  { %1464 = vmatpush1.bf16.msra.mxu0 %v4468_v3  ;;  %v4560_v3 = vld [vmem:[#allocation7 + $0x5a0] ss:$16 sps:$4 sm:$0xff]  }
 0x132   :  { %1626 = vmatpush1.bf16.msra.mxu1 %v4471_v4  ;;  %1465 = vmatprep.subr.bf16.mxu0 %v4476_v5  ;;  %v4563_v4 = vld [vmem:[#allocation7 + $0x588] ss:$16 sps:$4 sm:$0xff]   ;;  %v4568_v5 = vld [vmem:[#allocation7 + $0x5c4] ss:$16 sps:$4 sm:$0xff]  }
 0x133   :  { %1627 = vmatprep.subr.bf16.mxu1 %v4479_v6  ;;  %v4571_v6 = vld [vmem:[#allocation7 + $0x5ac] ss:$16 sps:$4 sm:$0xff]  }
 0x135   :  { %1466 = vmatpush1.bf16.msra.mxu0 %v4474_v7  ;;  %v4566_v7 = vld [vmem:[#allocation7 + $0x5c0] ss:$16 sps:$4 sm:$0xff]  }
 0x136   :  { %1628 = vmatpush1.bf16.msra.mxu1 %v4477_v8  ;;  %1476 = vmatprep.subr.bf16.mxu0 %v4484_v9  ;;  %v4569_v8 = vld [vmem:[#allocation7 + $0x5a8] ss:$16 sps:$4 sm:$0xff]   ;;  %v4574_v9 = vld [vmem:[#allocation7 + $0x5e4] ss:$16 sps:$4 sm:$0xff]  }
 0x137   :  { %1629 = vmatprep.subr.bf16.mxu1 %v4487_v10  ;;  %v4577_v10 = vld [vmem:[#allocation7 + $0x5cc] ss:$16 sps:$4 sm:$0xff]  }
 0x138   :  { %1468 = vmatmul.mubr.bf16.vlgmr.msra.gmra.mrb[0].mxu0 %v3749_v11 }
 0x139   :  { %1477 = vmatpush1.bf16.msra.mxu0 %v4482_v12  ;;  %1508 = vmatprep.mubr.bf16.mxu0 %v3752_v18  ;;  %v4575_v12 = vld [vmem:[#allocation7 + $0x5c8] ss:$16 sps:$4 sm:$0xff]  }
 0x13a   :  { %1630 = vmatpush1.bf16.msra.mxu1 %v4485_v13  ;;  %1478 = vmatprep.subr.bf16.mxu0 %v4490_v14  ;;  %v4582_v13 = vld [vmem:[#allocation7 + $0x5ec] ss:$16 sps:$4 sm:$0xff]   ;;  %v4586_v14 = vld [vmem:[#allocation10 + $0x40] sm:$0xff]  }
 0x13b   :  { %1640 = vmatprep.subr.bf16.mxu1 %v4493_v15  ;;  %v4580_v15 = vld [vmem:[#allocation7 + $0x5e8] ss:$16 sps:$4 sm:$0xff]  }
 0x13d   :  { %1632 = vmatmul.mubr.bf16.vlgmr.msra.gmra.mrb[4].mxu1 %v3749_v11  ;;  %1479 = vmatpush1.bf16.msra.mxu0 %v4488_v17  ;;  %v4572_v11 = vld [vmem:[#allocation7 + $0x5e0] ss:$16 sps:$4 sm:$0xff]   ;;  %v4587_v17 = vld [vmem:[#allocation10] sm:$0xff]  }
 0x13e   :  { %1641 = vmatpush1.bf16.msra.mxu1 %v4491_v19  ;;  %1480 = vmatprep.subr.bf16.mxu0 %v4496_v20  ;;  %v4585_v19 = vld [vmem:[#allocation7 + $0x60c] ss:$16 sps:$4 sm:$0xff]  }
 0x13f   :  { %1642 = vmatprep.subr.bf16.mxu1 %v4499_v21  ;;  %1672 = vmatprep.mubr.bf16.mxu1 %v3752_v18  ;;  %v3751_v18 = vcombine.low %v5403_v16, %v5403_v16  ;;  %v4588_v20 = vld [vmem:[#allocation10 + $0x48] sm:$0xff]   ;;  %v4583_v21 = vld [vmem:[#allocation7 + $0x608] ss:$16 sps:$4 sm:$0xff]   ;;  %v4593_v16 = vld [vmem:[#allocation10 + $0x58] sm:$0xff]  }
 0x141   :  { %1481 = vmatpush1.bf16.msra.mxu0 %v4494_v22  ;;  %v4589_v22 = vld [vmem:[#allocation10 + $0x8] sm:$0xff]  }
 0x142   :  { %1643 = vmatpush1.bf16.msra.mxu1 %v4497_v23  ;;  %1482 = vmatprep.subr.bf16.mxu0 %v4502_v24  ;;  %v4590_v23 = vld [vmem:[#allocation10 + $0x50] sm:$0xff]  }
 0x143   :  { %1644 = vmatprep.subr.bf16.mxu1 %v4505_v25  ;;  %v4591_v24 = vld [vmem:[#allocation10 + $0x10] sm:$0xff]   ;;  %v4594_v25 = vld [vmem:[#allocation10 + $0x18] sm:$0xff]  }
 0x145   :  { %1483 = vmatpush1.bf16.msra.mxu0 %v4500_v26  ;;  %v4596_v26 = vld [vmem:[#allocation10 + $0x60] sm:$0xff]  }
 0x146   :  { %1645 = vmatpush1.bf16.msra.mxu1 %v4503_v27  ;;  %1484 = vmatprep.subr.bf16.mxu0 %v4508_v28  ;;  %v4592_v27 = vld [vmem:[#allocation10 + $0x80] sm:$0xff]  }
 0x147   :  { %1646 = vmatprep.subr.bf16.mxu1 %v4511_v29  ;;  %v4597_v28 = vld [vmem:[#allocation10 + $0x20] sm:$0xff]   ;;  %v4599_v29 = vld [vmem:[#allocation10 + $0x68] sm:$0xff]  }
 0x149   :  { %1485 = vmatpush1.bf16.msra.mxu0 %v4506_v30  ;;  %v4595_v30 = vld [vmem:[#allocation10 + $0x88] sm:$0xff]  }
 0x14a   :  { %1647 = vmatpush1.bf16.msra.mxu1 %v4509_v31  ;;  %1486 = vmatprep.subr.bf16.mxu0 %v4514_v32  ;;  %v4901_v31 = vld [vmem:[#allocation2 + $0x18] ss:$0 sps:$4 sm:$0xff]  }
 0x14b   :  { %1648 = vmatprep.subr.bf16.mxu1 %v4517_v33  ;;  %v4598_v32 = vld [vmem:[#allocation10 + $0x90] sm:$0xff]  }
 0x14d   :  { %1487 = vmatpush1.bf16.msra.mxu0 %v4512_v34 }
 0x14e   :  { %1649 = vmatpush1.bf16.msra.mxu1 %v4515_v35  ;;  %1488 = vmatprep.subr.bf16.mxu0 %v4520_v36 }
 0x14f   :  { %1650 = vmatprep.subr.bf16.mxu1 %v4523_v37  ;;  %v4600_v37 = vld [vmem:[#allocation10 + $0x28] sm:$0xff]  }
 0x151   :  { %1489 = vmatpush1.bf16.msra.mxu0 %v4518_v38  ;;  %v4601_v38 = vld [vmem:[#allocation10 + $0x98] sm:$0xff]  }
 0x152   :  { %1651 = vmatpush1.bf16.msra.mxu1 %v4521_v39  ;;  %1490 = vmatprep.subr.bf16.mxu0 %v4526_v40  ;;  %v4602_v39 = vld [vmem:[#allocation10 + $0x70] sm:$0xff]  }
 0x153   :  { %1652 = vmatprep.subr.bf16.mxu1 %v4529_v41  ;;  %v4603_v40 = vld [vmem:[#allocation10 + $0x30] sm:$0xff]   ;;  %v4604_v41 = vld [vmem:[#allocation10 + $0xa0] sm:$0xff]  }
 0x155   :  { %1491 = vmatpush1.bf16.msra.mxu0 %v4524_v42  ;;  %v4605_v42 = vld [vmem:[#allocation10 + $0x78] sm:$0xff]  }
 0x156   :  { %1653 = vmatpush1.bf16.msra.mxu1 %v4527_v43  ;;  %1492 = vmatprep.subr.bf16.mxu0 %v4532_v44  ;;  %v4606_v43 = vld [vmem:[#allocation10 + $0x38] sm:$0xff]   ;;  %v4607_v44 = vld [vmem:[#allocation10 + $0xa8] sm:$0xff]  }
 0x157   :  { %1654 = vmatprep.subr.bf16.mxu1 %v4535_v45  ;;  %v4608_v45 = vld [vmem:[#allocation10 + $0xb0] sm:$0xff]  }
 0x159   :  { %1493 = vmatpush1.bf16.msra.mxu0 %v4530_v46  ;;  %v4609_v46 = vld [vmem:[#allocation10 + $0xb8] sm:$0xff]  }
 0x15a   :  { %1655 = vmatpush1.bf16.msra.mxu1 %v4533_v47  ;;  %1494 = vmatprep.subr.bf16.mxu0 %v4538_v48  ;;  %v4610_v47 = vld [vmem:[#allocation10 + $0xc0] sm:$0xff]   ;;  %v366_v48 = vlaneseq }
 0x15b   :  { %1656 = vmatprep.subr.bf16.mxu1 %v4541_v49 }
 0x15c   :  { %v5420_v49 = vshrl.u32 %v366_v48, 7  ;;  %v4647_v48 = vld [vmem:[#allocation16 + $0xe4] ss:$28 sps:$4 sm:$0xff]  }
 0x15d   :  { %1495 = vmatpush1.bf16.msra.mxu0 %v4536_v50 }
 0x15e   :  { %1657 = vmatpush1.bf16.msra.mxu1 %v4539_v51  ;;  %1496 = vmatprep.subr.bf16.mxu0 %v4544_v52  ;;  %v5423_v50 = vsub.s32 0, %v5420_v49  ;;  %v364_v51 = vld [vmem:[#allocation8] sm:$0xf]  ;;  %v5426_v52 = vsub.s32 1, %v5420_v49 }
 0x15f   :  { %1658 = vmatprep.subr.bf16.mxu1 %v4547_v53 }
 0x160   :  { %v369_v53 = vrot.slane %v364_v51, %v5423_v50 }
 0x161   :  { %1497 = vmatpush1.bf16.msra.mxu0 %v4542_v54  ;;  %v373_v54 = vrot.slane %v364_v51, %v5426_v52 }
 0x162   :  { %1659 = vmatpush1.bf16.msra.mxu1 %v4545_v55  ;;  %1498 = vmatprep.subr.bf16.mxu0 %v4550_v56 }
 0x163   :  { %1660 = vmatprep.subr.bf16.mxu1 %v4553_v57 }
 0x165   :  { %1499 = vmatpush1.bf16.msra.mxu0 %v4548_v58 }
 0x166   :  { %1661 = vmatpush1.bf16.msra.mxu1 %v4551_v59  ;;  %1500 = vmatprep.subr.bf16.mxu0 %v4556_v60 }
 0x167   :  { %1662 = vmatprep.subr.bf16.mxu1 %v4559_v61 }
 0x169   :  { %1501 = vmatpush1.bf16.msra.mxu0 %v4554_v62 }
 0x16a   :  { %1663 = vmatpush1.bf16.msra.mxu1 %v4557_v63  ;;  %1502 = vmatprep.subr.bf16.mxu0 %v4562_v1 }
 0x16b   :  { %1664 = vmatprep.subr.bf16.mxu1 %v4565_v2 }
 0x16d   :  { %1503 = vmatpush1.bf16.msra.mxu0 %v4560_v3 }
 0x16e   :  { %1665 = vmatpush1.bf16.msra.mxu1 %v4563_v4  ;;  %1504 = vmatprep.subr.bf16.mxu0 %v4568_v5  ;;  %v5431_v4 = vsub.s32 2, %v5420_v49  ;;  %v5434_v5 = vsub.s32 3, %v5420_v49 }
 0x16f   :  { %1666 = vmatprep.subr.bf16.mxu1 %v4571_v6 }
 0x170   :  { %v377_v6 = vrot.slane %v364_v51, %v5431_v4 }
 0x171   :  { %1505 = vmatpush1.bf16.msra.mxu0 %v4566_v7  ;;  %v381_v7 = vrot.slane %v364_v51, %v5434_v5  ;;  %v4645_v51 = vld [vmem:[#allocation16 + $0xe0] ss:$28 sps:$4 sm:$0xff]  }
 0x172   :  { %1667 = vmatpush1.bf16.msra.mxu1 %v4569_v8  ;;  %1506 = vmatprep.subr.bf16.mxu0 %v4574_v9 }
 0x173   :  { %1668 = vmatprep.subr.bf16.mxu1 %v4577_v10 }
 0x175   :  { %1507 = vmatpush1.bf16.msra.mxu0 %v4572_v11 }
 0x176   :  { %1669 = vmatpush1.bf16.msra.mxu1 %v4575_v12  ;;  %4177 = vmatprep.subr.bf16.mxu0 %v4586_v14 }
 0x177   :  { %1670 = vmatprep.subr.bf16.mxu1 %v4582_v13 }
 0x178   :  { %1509 = vmatmul.mubr.bf16.vlgmr.msra.gmra.mrb[0].mxu0 %v3751_v18 }
 0x179   :  { %4178 = vmatpush3.bf16.msra.mxu0 %v4587_v17 }
 0x17a   :  { %1671 = vmatpush1.bf16.msra.mxu1 %v4580_v15  ;;  %4179 = vmatprep.subr.bf16.mxu0 %v4588_v20  ;;  %v4613_v20 = vld [vmem:[#allocation13 + $0x4] ss:$16 sps:$4 sm:$0xff]  }
 0x17b   :  { %1681 = vmatprep.subr.bf16.mxu1 %v4585_v19  ;;  %v4611_v19 = vld [vmem:[#allocation13] ss:$16 sps:$4 sm:$0xff]  }
 0x17d   :  { %1673 = vmatmul.mubr.bf16.vlgmr.msra.gmra.mrb[4].mxu1 %v3751_v18  ;;  %4180 = vmatpush3.bf16.msra.mxu0 %v4589_v22 }
 0x17e   :  { %1682 = vmatpush1.bf16.msra.mxu1 %v4583_v21  ;;  %1713 = vmatprep.mubr.bf16.mxu1 %v5198_v0 }
 0x17f   :  { %1980 = vmatprep.subr.bf16.mxu1 %v5198_v0  ;;  %4181 = vmatprep.subr.bf16.mxu0 %v4590_v23 }
 0x181   :  { %4182 = vmatpush3.bf16.msra.mxu0 %v4591_v24 }
 0x182   :  { %4183 = vmatprep.subr.bf16.mxu0 %v4593_v16 }
 0x185   :  { %4184 = vmatpush3.bf16.msra.mxu0 %v4594_v25  ;;  %v3952_v25 = vld [vmem:[#allocation11] ss:$0 sm:$0xff] }
 0x186   :  { %4185 = vmatprep.subr.bf16.mxu0 %v4596_v26 }
 0x189   :  { %3951 = vmatmul.mubr.msk.bf16.vlgmr.msra.gmra.mrb[4].mxu1 %vm1390_vm0, %v4901_v31  ;;  %4186 = vmatpush3.bf16.msra.mxu0 %v4597_v28 }
 0x18a   :  { %1981 = vmatpush1.bf16.msra.mxu1 %v4592_v27  ;;  %4187 = vmatprep.subr.bf16.mxu0 %v4599_v29 }
 0x18b   :  { %1982 = vmatprep.subr.bf16.mxu1 %v5198_v0 }
 0x18d   :  { %4188 = vmatpush3.bf16.msra.mxu0 %v4600_v37 }
 0x18e   :  { %1983 = vmatpush1.bf16.msra.mxu1 %v4595_v30  ;;  %4189 = vmatprep.subr.bf16.mxu0 %v4602_v39 }
 0x18f   :  { %1984 = vmatprep.subr.bf16.mxu1 %v5198_v0 }
 0x190   :  { %v1551_v33 = vpop.f32.mrb[0].mxu1 }
 0x191   :  { %v1553_v34 = vpop.f32.mrb[1].mxu1  ;;  %4190 = vmatpush3.bf16.msra.mxu0 %v4603_v40  ;;  %v4621_v40 = vld [vmem:[#allocation16] ss:$28 sps:$4 sm:$0xff]  }
 0x192   :  { %v1555_v35 = vpop.f32.mrb[2].mxu1  ;;  %1985 = vmatpush1.bf16.msra.mxu1 %v4598_v32  ;;  %4191 = vmatprep.subr.bf16.mxu0 %v4605_v42  ;;  %v4629_v42 = vld [vmem:[#allocation16 + $0x3c] ss:$28 sps:$4 sm:$0xff]  }
 0x193   :  { %v1556_v36 = vpop.f32.mrb[3].mxu1  ;;  %1986 = vmatprep.subr.bf16.mxu1 %v5198_v0 }
 0x195   :  { %4192 = vmatpush3.bf16.msra.mxu0 %v4606_v43  ;;  %v4627_v43 = vld [vmem:[#allocation16 + $0x38] ss:$28 sps:$4 sm:$0xff]  }
 0x196   :  { %1987 = vmatpush1.bf16.msra.mxu1 %v4601_v38  ;;  %v4618_v38 = vld [vmem:[#allocation13 + $0xc] ss:$16 sps:$4 sm:$0xff]  }
 0x197   :  { %1988 = vmatprep.subr.bf16.mxu1 %v5198_v0 }
 0x19a   :  { %1989 = vmatpush1.bf16.msra.mxu1 %v4604_v41  ;;  %v4623_v41 = vld [vmem:[#allocation16 + $0x4] ss:$28 sps:$4 sm:$0xff]  }
 0x19b   :  { %1990 = vmatprep.subr.bf16.mxu1 %v5198_v0  ;;  %3336 = vmatprep.subr.bf16.mxu0 %v4623_v41  ;;  %v4684_v41 = vld [vmem:[#allocation16 + $0x238] ss:$28 sps:$4 sm:$0xff]  }
 0x19e   :  { %1991 = vmatpush1.bf16.msra.mxu1 %v4607_v44  ;;  %v4635_v44 = vld [vmem:[#allocation16 + $0x74] ss:$28 sps:$4 sm:$0xff]  }
 0x19f   :  { %1992 = vmatprep.subr.bf16.mxu1 %v5198_v0 }
 0x1a2   :  { %1993 = vmatpush1.bf16.msra.mxu1 %v4608_v45  ;;  %v4633_v45 = vld [vmem:[#allocation16 + $0x70] ss:$28 sps:$4 sm:$0xff]  }
 0x1a3   :  { %1994 = vmatprep.subr.bf16.mxu1 %v5198_v0 }
 0x1a6   :  { %1995 = vmatpush1.bf16.msra.mxu1 %v4609_v46  ;;  %v4641_v46 = vld [vmem:[#allocation16 + $0xac] ss:$28 sps:$4 sm:$0xff]  }
 0x1a7   :  { %1996 = vmatprep.subr.bf16.mxu1 %v5198_v0 }
 0x1aa   :  { %1997 = vmatpush1.bf16.msra.mxu1 %v4610_v47  ;;  %v4639_v47 = vld [vmem:[#allocation16 + $0xa8] ss:$28 sps:$4 sm:$0xff]  }
 0x1ab   :  { %2106 = vmatprep.subr.bf16.mxu1 %v4613_v20 }
 0x24b   :  { %v1510_v55 = vpop.f32.mrb[0].mxu0 }
 0x24c   :  { %v4221_v56 = vadd.f32 %v1510_v55, %v369_v53  ;;  %v1512_v57 = vpop.f32.mrb[1].mxu0  ;;  %v4653_v53 = vld [vmem:[#allocation16 + $0x11c] ss:$28 sps:$4 sm:$0xff]   ;;  %v4659_v55 = vld [vmem:[#allocation16 + $0x154] ss:$28 sps:$4 sm:$0xff]  }
 0x24d   :  { %v4223_v58 = vadd.f32 %v1512_v57, %v373_v54  ;;  %v1514_v59 = vpop.f32.mrb[2].mxu0  ;;  %v4651_v54 = vld [vmem:[#allocation16 + $0x118] ss:$28 sps:$4 sm:$0xff]   ;;  %v4665_v57 = vld [vmem:[#allocation16 + $0x18c] ss:$28 sps:$4 sm:$0xff]  }
 0x24e   :  { %v4222_v60 = vadd.f32 %v4221_v56, %v1551_v33  ;;  %v1515_v61 = vpop.f32.mrb[3].mxu0  ;;  %v2035_v33 = vld [vmem:[#allocation13 + $0x20] sm:$0x33]  ;;  %v4671_v59 = vld [vmem:[#allocation16 + $0x1c4] ss:$28 sps:$4 sm:$0xff]  }
 0x24f   :  { %v4224_v62 = vadd.f32 %v4223_v58, %v1553_v34  ;;  %v3984_v35 = vcombine.high %v2035_v33, %v2035_v33  ;;  %v3983_v36 = vcombine.low %v2035_v33, %v2035_v33  ;;  %v4657_v56 = vld [vmem:[#allocation16 + $0x150] ss:$28 sps:$4 sm:$0xff]   ;;  %v4663_v58 = vld [vmem:[#allocation16 + $0x188] ss:$28 sps:$4 sm:$0xff]   ;;  %v4677_v61 = vld [vmem:[#allocation16 + $0x1fc] ss:$28 sps:$4 sm:$0xff]  }
 0x250   :  { %v1722_v63 = vmax.f32 %v4222_v60, 0.0  ;;  %v4669_v60 = vld [vmem:[#allocation16 + $0x1c0] ss:$28 sps:$4 sm:$0xff]   ;;  %v4660_v33 = vld [vmem:[#allocation16 + $0x158] ss:$28 sps:$4 sm:$0xff]  }
 0x251   :  { %v1723_v1 = vmax.f32 %v4224_v62, 0.0  ;;  %v2095_v37 = vsel %vm2093_vm2, %v3983_v36, 0  ;;  %v4675_v62 = vld [vmem:[#allocation16 + $0x1f8] ss:$28 sps:$4 sm:$0xff]   ;;  %v4674_v36 = vld [vmem:[#allocation16 + $0x1cc] ss:$28 sps:$4 sm:$0xff]  }
 0x252   :  { %v1726_v3 = vpack.c.bf16 %v1722_v63, %v1722_v63  ;;  %v4683_v63 = vld [vmem:[#allocation16 + $0x234] ss:$28 sps:$4 sm:$0xff]  }
 0x253   :  { %v1727_v2 = vpack.c.bf16 %v1723_v1, %v1723_v1  ;;  %v4681_v1 = vld [vmem:[#allocation16 + $0x230] ss:$28 sps:$4 sm:$0xff]  }
 0x255   :  { %1972 = vmatprep.mubr.bf16.mxu0 %v1727_v2  ;;  %v4689_v2 = vld [vmem:[#allocation16 + $0x26c] ss:$28 sps:$4 sm:$0xff]  }
 0x256   :  { %1973 = vmatmul.mubr.bf16.vlgmr.msra.gmra.mrb[4].mxu0 %v1726_v3  ;;  %v4687_v3 = vld [vmem:[#allocation16 + $0x268] ss:$28 sps:$4 sm:$0xff]  }
 0x257   :  { %3337 = vmatpush1.bf16.msra.mxu0 %v4621_v40  ;;  %v4686_v40 = vld [vmem:[#allocation16 + $0x23c] ss:$28 sps:$4 sm:$0xff]  }
 0x258   :  { %3338 = vmatprep.subr.bf16.mxu0 %v4629_v42  ;;  %v4692_v42 = vld [vmem:[#allocation16 + $0x274] ss:$28 sps:$4 sm:$0xff]  }
 0x25b   :  { %3339 = vmatpush1.bf16.msra.mxu0 %v4627_v43  ;;  %v4690_v43 = vld [vmem:[#allocation16 + $0x270] ss:$28 sps:$4 sm:$0xff]  }
 0x25c   :  { %v1715_v8 = vpop.f32.mrb[4].mxu1  ;;  %3340 = vmatprep.subr.bf16.mxu0 %v4635_v44  ;;  %v4698_v44 = vld [vmem:[#allocation16 + $0x2ac] ss:$28 sps:$4 sm:$0xff]  }
 0x25d   :  { %v4225_v9 = vadd.f32 %v1715_v8, %v377_v6  ;;  %v1717_v10 = vpop.f32.mrb[5].mxu1  ;;  %v4695_v6 = vld [vmem:[#allocation16 + $0x2a4] ss:$28 sps:$4 sm:$0xff]   ;;  %v4701_v8 = vld [vmem:[#allocation16 + $0x2dc] ss:$28 sps:$4 sm:$0xff]  }
 0x25e   :  { %v4226_v11 = vadd.f32 %v1717_v10, %v381_v7  ;;  %v1719_v12 = vpop.f32.mrb[6].mxu1  ;;  %v4693_v7 = vld [vmem:[#allocation16 + $0x2a0] ss:$28 sps:$4 sm:$0xff]  }
 0x25f   :  { %v1724_v13 = vmax.f32 %v4225_v9, 0.0  ;;  %v1720_v14 = vpop.f32.mrb[7].mxu1  ;;  %3341 = vmatpush1.bf16.msra.mxu0 %v4633_v45  ;;  %v4699_v9 = vld [vmem:[#allocation16 + $0x2d8] ss:$28 sps:$4 sm:$0xff]   ;;  %v4696_v45 = vld [vmem:[#allocation16 + $0x2a8] ss:$28 sps:$4 sm:$0xff]  }
 0x260   :  { %v1725_v15 = vmax.f32 %v4226_v11, 0.0  ;;  %3342 = vmatprep.subr.bf16.mxu0 %v4641_v46  ;;  %v2023_v10 = vld [vmem:[#allocation5] sm:$0xff]  ;;  %v4704_v46 = vld [vmem:[#allocation16 + $0x2e4] ss:$28 sps:$4 sm:$0xff]  }
 0x261   :  { %v1728_v18 = vpack.c.bf16 %v1724_v13, %v1724_v13  ;;  %v2036_v13 = vld [vmem:[#allocation13 + $0x28] sm:$0x33] }
 0x262   :  { %v1729_v17 = vpack.c.bf16 %v1725_v15, %v1725_v15  ;;  %v4616_v15 = vld [vmem:[#allocation13 + $0x8] ss:$16 sps:$4 sm:$0xff]  }
 0x263   :  { %3343 = vmatpush1.bf16.msra.mxu0 %v4639_v47  ;;  %v4702_v47 = vld [vmem:[#allocation16 + $0x2e0] ss:$28 sps:$4 sm:$0xff]  }
 0x264   :  { %3978 = vmatprep.mubr.msk.bf16.mxu1 %vm1390_vm0, %v1729_v17  ;;  %3344 = vmatprep.subr.bf16.mxu0 %v4647_v48  ;;  %v4707_v48 = vld [vmem:[#allocation16 + $0x314] ss:$28 sps:$4 sm:$0xff]  }
 0x265   :  { %2013 = vmatmul.mubr.bf16.vlgmr.msra.gmra.mrb[8].mxu1 %v1728_v18  ;;  %v3986_v18 = vcombine.high %v2036_v13, %v2036_v13 }
 0x266   :  { %2138 = vmatprep.mubr.bf16.mxu1 %v5198_v0  ;;  %2107 = vmatpush1.bf16.msra.mxu1 %v4611_v19  ;;  %v3985_v19 = vcombine.low %v2036_v13, %v2036_v13  ;;  %v4720_v13 = vld [vmem:[#allocation16 + $0x388] ss:$28 sps:$4 sm:$0xff]  }
 0x267   :  { %3987 = vmatprep.subr.msk.bf16.mxu1 %vm2093_vm2, %v3984_v35  ;;  %3345 = vmatpush1.bf16.msra.mxu0 %v4645_v51  ;;  %v4666_v35 = vld [vmem:[#allocation16 + $0x190] ss:$28 sps:$4 sm:$0xff]   ;;  %v4710_v51 = vld [vmem:[#allocation16 + $0x31c] ss:$28 sps:$4 sm:$0xff]  }
 0x268   :  { %3346 = vmatprep.subr.bf16.mxu0 %v4653_v53  ;;  %v2101_v20 = vsel %vm2093_vm2, %v3985_v19, 0  ;;  %v4705_v53 = vld [vmem:[#allocation16 + $0x310] ss:$28 sps:$4 sm:$0xff]  }
 0x26a   :  { %2109 = vmatpush1.bf16.msra.mxu1 %v2095_v37  ;;  %v4672_v37 = vld [vmem:[#allocation16 + $0x1c8] ss:$28 sps:$4 sm:$0xff]  }
 0x26b   :  { %2147 = vmatprep.subr.bf16.mxu1 %v4618_v38  ;;  %3347 = vmatpush1.bf16.msra.mxu0 %v4651_v54  ;;  %v4680_v38 = vld [vmem:[#allocation16 + $0x204] ss:$28 sps:$4 sm:$0xff]   ;;  %v4708_v54 = vld [vmem:[#allocation16 + $0x318] ss:$28 sps:$4 sm:$0xff]  }
 0x26c   :  { %3348 = vmatprep.subr.bf16.mxu0 %v4659_v55  ;;  %v4713_v55 = vld [vmem:[#allocation16 + $0x34c] ss:$28 sps:$4 sm:$0xff]  }
 0x26f   :  { %3349 = vmatpush1.bf16.msra.mxu0 %v4657_v56  ;;  %v4716_v56 = vld [vmem:[#allocation16 + $0x354] ss:$28 sps:$4 sm:$0xff]  }
 0x270   :  { %3350 = vmatprep.subr.bf16.mxu0 %v4665_v57  ;;  %v4711_v57 = vld [vmem:[#allocation16 + $0x348] ss:$28 sps:$4 sm:$0xff]  }
 0x273   :  { %3351 = vmatpush1.bf16.msra.mxu0 %v4663_v58  ;;  %v4714_v58 = vld [vmem:[#allocation16 + $0x350] ss:$28 sps:$4 sm:$0xff]  }
 0x274   :  { %3352 = vmatprep.subr.bf16.mxu0 %v4671_v59  ;;  %v4719_v59 = vld [vmem:[#allocation16 + $0x384] ss:$28 sps:$4 sm:$0xff]  }
 0x277   :  { %3353 = vmatpush1.bf16.msra.mxu0 %v4669_v60  ;;  %v4722_v60 = vld [vmem:[#allocation16 + $0x38c] ss:$28 sps:$4 sm:$0xff]  }
 0x278   :  { %3354 = vmatprep.subr.bf16.mxu0 %v4677_v61  ;;  %v5450_v61 = vld [vmem:[#allocation14] sm:$0xf] }
 0x27b   :  { %3355 = vmatpush1.bf16.msra.mxu0 %v4675_v62  ;;  %v2042_v62 = vrot.slane %v5450_v61, %v5423_v50 }
 0x27c   :  { %3356 = vmatprep.subr.bf16.mxu0 %v4683_v63  ;;  %v2046_v63 = vrot.slane %v5450_v61, %v5426_v52 }
 0x27f   :  { %3357 = vmatpush1.bf16.msra.mxu0 %v4681_v1 }
 0x280   :  { %3358 = vmatprep.subr.bf16.mxu0 %v4689_v2 }
 0x283   :  { %3359 = vmatpush1.bf16.msra.mxu0 %v4687_v3 }
 0x284   :  { %3360 = vmatprep.subr.bf16.mxu0 %v4695_v6 }
 0x287   :  { %3361 = vmatpush1.bf16.msra.mxu0 %v4693_v7 }
 0x288   :  { %3362 = vmatprep.subr.bf16.mxu0 %v4701_v8 }
 0x28b   :  { %3363 = vmatpush1.bf16.msra.mxu0 %v4699_v9 }
 0x28c   :  { %3364 = vmatprep.subr.bf16.mxu0 %v4707_v48  ;;  %v4761_v48 = vld [vmem:[#allocation16 + $0x50c] ss:$28 sps:$4 sm:$0xff]  }
 0x28f   :  { %3365 = vmatpush1.bf16.msra.mxu0 %v4705_v53  ;;  %v4759_v53 = vld [vmem:[#allocation16 + $0x508] ss:$28 sps:$4 sm:$0xff]  }
 0x290   :  { %3366 = vmatprep.subr.bf16.mxu0 %v4713_v55 }
 0x293   :  { %3367 = vmatpush1.bf16.msra.mxu0 %v4711_v57  ;;  %v4770_v57 = vld [vmem:[#allocation16 + $0x54c] ss:$28 sps:$4 sm:$0xff]  }
 0x294   :  { %3377 = vmatprep.subr.bf16.mxu0 %v4719_v59  ;;  %v4768_v59 = vld [vmem:[#allocation16 + $0x548] ss:$28 sps:$4 sm:$0xff]  }
 0x329   :  { %v4193_v21 = vpop.f32.mrb[4].mxu0 }
 0x32a   :  { %v4194_v22 = vpop.f32.mrb[5].mxu0 }
 0x32b   :  { %v4195_v23 = vadd.f32 %v4194_v22, %v4193_v21  ;;  %v4196_v24 = vpop.f32.mrb[6].mxu0  ;;  %v4626_v21 = vld [vmem:[#allocation16 + $0xc] ss:$28 sps:$4 sm:$0xff]  }
 0x32c   :  { %v4197_v16 = vpop.f32.mrb[7].mxu0  ;;  %v4624_v22 = vld [vmem:[#allocation16 + $0x8] ss:$28 sps:$4 sm:$0xff]   ;;  %v4630_v24 = vld [vmem:[#allocation16 + $0x40] ss:$28 sps:$4 sm:$0xff]  }
 0x32d   :  { %v1975_v26 = vadd.f32 %v4195_v23, %v3952_v25  ;;  %v4632_v23 = vld [vmem:[#allocation16 + $0x44] ss:$28 sps:$4 sm:$0xff]   ;;  %v4638_v16 = vld [vmem:[#allocation16 + $0x7c] ss:$28 sps:$4 sm:$0xff]  }
 0x32e   :  { %v4636_v25 = vld [vmem:[#allocation16 + $0x78] ss:$28 sps:$4 sm:$0xff]  }
 0x338   :  { %v2014_v27 = vpop.f32.mrb[8].mxu1 }
 0x339   :  { %v5440_v28 = vadd.f32 %v2014_v27, %v1975_v26  ;;  %v2016_v29 = vpop.f32.mrb[9].mxu1  ;;  %v4644_v26 = vld [vmem:[#allocation16 + $0xb4] ss:$28 sps:$4 sm:$0xff]  }
 0x33a   :  { %v2017_v30 = vpop.f32.mrb[10].mxu1  ;;  %v4642_v27 = vld [vmem:[#allocation16 + $0xb0] ss:$28 sps:$4 sm:$0xff]   ;;  %v4648_v29 = vld [vmem:[#allocation16 + $0xe8] ss:$28 sps:$4 sm:$0xff]  }
 0x33b   :  { %v2020_v31 = vmul.f32 0.5, %v5440_v28  ;;  %v2018_v32 = vpop.f32.mrb[11].mxu1  ;;  %3712 = vst.msk [vmem:[#allocation20] sm:$0xff] %vm3711_vm1, %v5440_v28  ;;  %v4656_v30 = vld [vmem:[#allocation16 + $0x124] ss:$28 sps:$4 sm:$0xff]  }
 0x33c   :  { %v4662_v32 = vld [vmem:[#allocation16 + $0x15c] ss:$28 sps:$4 sm:$0xff]  }
 0x33d   :  { %v2021_v34 = vmul.f32 1.442695, %v2020_v31  ;;  %v4654_v31 = vld [vmem:[#allocation16 + $0x120] ss:$28 sps:$4 sm:$0xff]  }
 0x33f   :  { %4871 = vpow2.f32 %v2021_v34  ;;  %v4668_v34 = vld [vmem:[#allocation16 + $0x194] ss:$28 sps:$4 sm:$0xff]  }
 0x349   :  { %v4872_v39 = vpop.eup %4871 }
 0x34a   :  { %2025 = vrot.lane.b32.xlu0 %v4872_v39, %s5199_s9  ;;  %v4678_v39 = vld [vmem:[#allocation16 + $0x200] ss:$28 sps:$4 sm:$0xff]  }
 0x3bc   :  { %v2026_v11 = vpop.permute.xlu0 %2025 }
 0x3bd   :  { %v2028_v12 = vmul.f32 %v2026_v11, %v2023_v10 }
 0x3bf   :  { %v2029_v14 = vadd.f32 %v2028_v12, %v5440_v28  ;;  %v4650_v28 = vld [vmem:[#allocation16 + $0xec] ss:$28 sps:$4 sm:$0xff]   ;;  %v4717_v12 = vld [vmem:[#allocation16 + $0x380] ss:$28 sps:$4 sm:$0xff]  }
 0x3c1   :  { %v2030_v17 = vpack.c.bf16 %v2029_v14, %v2029_v14  ;;  %v2054_v14 = vrot.slane %v5450_v61, %v5434_v5 }
 0x3c3   :  { %3988 = vmatmul.mubr.msk.bf16.vlgmr.msra.gmra.mrb[12].mxu1 %vm2089_vm3, %v2030_v17 }
 0x3c4   :  { %2148 = vmatpush1.bf16.msra.mxu1 %v4616_v15  ;;  %2179 = vmatprep.mubr.bf16.mxu1 %v5198_v0 }
 0x3c5   :  { %3989 = vmatprep.subr.msk.bf16.mxu1 %vm2093_vm2, %v3986_v18  ;;  %v4728_v18 = vld [vmem:[#allocation16 + $0x3c4] ss:$28 sps:$4 sm:$0xff]  }
 0x3c8   :  { %2150 = vmatpush1.bf16.msra.mxu1 %v2101_v20 }
 0x3c9   :  { %3418 = vmatprep.subr.bf16.mxu1 %v4626_v21 }
 0x3cb   :  { %3990 = vmatmul.mubr.msk.bf16.vlgmr.msra.gmra.mrb[16].mxu1 %vm2089_vm3, %v2030_v17  ;;  %v4725_v17 = vld [vmem:[#allocation16 + $0x3bc] ss:$28 sps:$4 sm:$0xff]  }
 0x3cc   :  { %3419 = vmatpush1.bf16.msra.mxu1 %v4624_v22 }
 0x3cd   :  { %3420 = vmatprep.subr.bf16.mxu1 %v4632_v23  ;;  %v4723_v23 = vld [vmem:[#allocation16 + $0x3b8] ss:$28 sps:$4 sm:$0xff]  }
 0x3d0   :  { %3421 = vmatpush1.bf16.msra.mxu1 %v4630_v24  ;;  %v4726_v24 = vld [vmem:[#allocation16 + $0x3c0] ss:$28 sps:$4 sm:$0xff]  }
 0x3d1   :  { %3422 = vmatprep.subr.bf16.mxu1 %v4638_v16 }
 0x3d4   :  { %3423 = vmatpush1.bf16.msra.mxu1 %v4636_v25  ;;  %v4731_v25 = vld [vmem:[#allocation16 + $0x3f4] ss:$28 sps:$4 sm:$0xff]  }
 0x3d5   :  { %3424 = vmatprep.subr.bf16.mxu1 %v4644_v26  ;;  %v4734_v26 = vld [vmem:[#allocation16 + $0x3fc] ss:$28 sps:$4 sm:$0xff]  }
 0x3d8   :  { %3425 = vmatpush1.bf16.msra.mxu1 %v4642_v27 }
 0x3d9   :  { %3426 = vmatprep.subr.bf16.mxu1 %v4650_v28 }
 0x3dc   :  { %3427 = vmatpush1.bf16.msra.mxu1 %v4648_v29  ;;  %v4729_v29 = vld [vmem:[#allocation16 + $0x3f0] ss:$28 sps:$4 sm:$0xff]  }
 0x3dd   :  { %3428 = vmatprep.subr.bf16.mxu1 %v4656_v30  ;;  %v4732_v30 = vld [vmem:[#allocation16 + $0x3f8] ss:$28 sps:$4 sm:$0xff]  }
 0x3e0   :  { %3429 = vmatpush1.bf16.msra.mxu1 %v4654_v31  ;;  %v4737_v31 = vld [vmem:[#allocation16 + $0x42c] ss:$28 sps:$4 sm:$0xff]  }
 0x3e1   :  { %3430 = vmatprep.subr.bf16.mxu1 %v4662_v32  ;;  %v4740_v32 = vld [vmem:[#allocation16 + $0x434] ss:$28 sps:$4 sm:$0xff]  }
 0x3e4   :  { %3431 = vmatpush1.bf16.msra.mxu1 %v4660_v33  ;;  %v4735_v33 = vld [vmem:[#allocation16 + $0x428] ss:$28 sps:$4 sm:$0xff]  }
 0x3e5   :  { %3432 = vmatprep.subr.bf16.mxu1 %v4668_v34  ;;  %v4738_v34 = vld [vmem:[#allocation16 + $0x430] ss:$28 sps:$4 sm:$0xff]  }
 0x3e8   :  { %3433 = vmatpush1.bf16.msra.mxu1 %v4666_v35  ;;  %v4743_v35 = vld [vmem:[#allocation16 + $0x464] ss:$28 sps:$4 sm:$0xff]  }
 0x3e9   :  { %3434 = vmatprep.subr.bf16.mxu1 %v4674_v36  ;;  %v4746_v36 = vld [vmem:[#allocation16 + $0x46c] ss:$28 sps:$4 sm:$0xff]  }
 0x3ec   :  { %3435 = vmatpush1.bf16.msra.mxu1 %v4672_v37  ;;  %v4741_v37 = vld [vmem:[#allocation16 + $0x460] ss:$28 sps:$4 sm:$0xff]  }
 0x3ed   :  { %3436 = vmatprep.subr.bf16.mxu1 %v4680_v38  ;;  %v4744_v38 = vld [vmem:[#allocation16 + $0x468] ss:$28 sps:$4 sm:$0xff]  }
 0x3f0   :  { %3437 = vmatpush1.bf16.msra.mxu1 %v4678_v39  ;;  %v4749_v39 = vld [vmem:[#allocation16 + $0x49c] ss:$28 sps:$4 sm:$0xff]  }
 0x3f1   :  { %3438 = vmatprep.subr.bf16.mxu1 %v4686_v40  ;;  %v4752_v40 = vld [vmem:[#allocation16 + $0x4a4] ss:$28 sps:$4 sm:$0xff]  }
 0x3f4   :  { %3439 = vmatpush1.bf16.msra.mxu1 %v4684_v41  ;;  %v4747_v41 = vld [vmem:[#allocation16 + $0x498] ss:$28 sps:$4 sm:$0xff]  }
 0x3f5   :  { %3440 = vmatprep.subr.bf16.mxu1 %v4692_v42  ;;  %v4750_v42 = vld [vmem:[#allocation16 + $0x4a0] ss:$28 sps:$4 sm:$0xff]  }
 0x3f8   :  { %3441 = vmatpush1.bf16.msra.mxu1 %v4690_v43  ;;  %v4755_v43 = vld [vmem:[#allocation16 + $0x4d4] ss:$28 sps:$4 sm:$0xff]  }
 0x3f9   :  { %3442 = vmatprep.subr.bf16.mxu1 %v4698_v44  ;;  %v4758_v44 = vld [vmem:[#allocation16 + $0x4dc] ss:$28 sps:$4 sm:$0xff]  }
 0x3fc   :  { %3443 = vmatpush1.bf16.msra.mxu1 %v4696_v45  ;;  %v4753_v45 = vld [vmem:[#allocation16 + $0x4d0] ss:$28 sps:$4 sm:$0xff]  }
 0x3fd   :  { %3444 = vmatprep.subr.bf16.mxu1 %v4704_v46  ;;  %v4756_v46 = vld [vmem:[#allocation16 + $0x4d8] ss:$28 sps:$4 sm:$0xff]  }
 0x400   :  { %3445 = vmatpush1.bf16.msra.mxu1 %v4702_v47  ;;  %v2050_v47 = vrot.slane %v5450_v61, %v5431_v4  ;;  %v4773_v61 = vld [vmem:[#allocation16 + $0x14] ss:$28 sps:$4 sm:$0xff]  }
 0x401   :  { %3446 = vmatprep.subr.bf16.mxu1 %v4710_v51  ;;  %v4764_v51 = vld [vmem:[#allocation16 + $0x514] ss:$28 sps:$4 sm:$0xff]  }
 0x404   :  { %3447 = vmatpush1.bf16.msra.mxu1 %v4708_v54  ;;  %v4762_v54 = vld [vmem:[#allocation16 + $0x510] ss:$28 sps:$4 sm:$0xff]  }
 0x405   :  { %3448 = vmatprep.subr.bf16.mxu1 %v4716_v56  ;;  %v4767_v56 = vld [vmem:[#allocation16 + $0x544] ss:$28 sps:$4 sm:$0xff]  }
 0x408   :  { %3449 = vmatpush1.bf16.msra.mxu1 %v4714_v58  ;;  %v4765_v58 = vld [vmem:[#allocation16 + $0x540] ss:$28 sps:$4 sm:$0xff]  }
 0x409   :  { %3459 = vmatprep.subr.bf16.mxu1 %v4722_v60 }
 0x496   :  { %v2140_v1 = vpop.f32.mrb[12].mxu1 }
 0x497   :  { %v2141_v2 = vadd.f32 %v2140_v1, %v2042_v62  ;;  %v2142_v3 = vpop.f32.mrb[13].mxu1  ;;  %v4774_v62 = vld [vmem:[#allocation16 + $0x1d8] ss:$28 sps:$4 sm:$0xff]  }
 0x498   :  { %v2143_v6 = vadd.f32 %v2142_v3, %v2046_v63  ;;  %v2144_v7 = vpop.f32.mrb[14].mxu1  ;;  %v4771_v63 = vld [vmem:[#allocation16 + $0x10] ss:$28 sps:$4 sm:$0xff]  }
 0x499   :  { %v2188_v8 = vmax.f32 %v2141_v2, 0.0  ;;  %v2145_v9 = vpop.f32.mrb[15].mxu1  ;;  %v4775_v2 = vld [vmem:[#allocation16 + $0x18] ss:$28 sps:$4 sm:$0xff]   ;;  %v4778_v3 = vld [vmem:[#allocation16 + $0x4c] ss:$28 sps:$4 sm:$0xff]  }
 0x49a   :  { %v2189_v10 = vmax.f32 %v2143_v6, 0.0  ;;  %v4779_v6 = vld [vmem:[#allocation16 + $0x210] ss:$28 sps:$4 sm:$0xff]   ;;  %v4776_v7 = vld [vmem:[#allocation16 + $0x48] ss:$28 sps:$4 sm:$0xff]  }
 0x49b   :  { %v5460_v15 = vpack.c.bf16 %v2188_v8, %v2188_v8  ;;  %v4780_v8 = vld [vmem:[#allocation16 + $0x50] ss:$28 sps:$4 sm:$0xff]   ;;  %v4783_v9 = vld [vmem:[#allocation16 + $0x84] ss:$28 sps:$4 sm:$0xff]  }
 0x49c   :  { %v5456_v11 = vpack.c.bf16 %v2189_v10, %v2189_v10  ;;  %v4784_v10 = vld [vmem:[#allocation16 + $0x248] ss:$28 sps:$4 sm:$0xff]  }
 0x49e   :  { %v5462_v19 = vpop.f32.mrb[16].mxu1  ;;  %3368 = vmatprep.mubr.bf16.mxu0 %v5456_v11  ;;  %3450 = vmatprep.mubr.bf16.mxu1 %v5456_v11 }
 0x49f   :  { %v2183_v20 = vpop.f32.mrb[17].mxu1  ;;  %3369 = vmatmul.mubr.bf16.vlgmr.msra.gmra.mrb[8].mxu0 %v5460_v15  ;;  %3451 = vmatmul.mubr.bf16.vlgmr.msra.gmra.mrb[20].mxu1 %v5460_v15  ;;  %v2182_v55 = vadd.f32 %v5462_v19, %v2050_v47  ;;  %v4790_v19 = vld [vmem:[#allocation16 + $0xc0] ss:$28 sps:$4 sm:$0xff]   ;;  %v4829_v47 = vld [vmem:[#allocation16 + $0x2b4] ss:$28 sps:$4 sm:$0xff]  }
 0x4a0   :  { %v2184_v21 = vadd.f32 %v2183_v20, %v2054_v14  ;;  %3378 = vmatpush1.bf16.msra.mxu0 %v4717_v12  ;;  %3460 = vmatpush1.bf16.msra.mxu1 %v4720_v13  ;;  %v2185_v22 = vpop.f32.mrb[18].mxu1  ;;  %v4781_v12 = vld [vmem:[#allocation16 + $0x80] ss:$28 sps:$4 sm:$0xff]   ;;  %v4785_v13 = vld [vmem:[#allocation16 + $0x88] ss:$28 sps:$4 sm:$0xff]  }
 0x4a1   :  { %v2186_v16 = vpop.f32.mrb[19].mxu1  ;;  %3379 = vmatprep.subr.bf16.mxu0 %v4725_v17  ;;  %3461 = vmatprep.subr.bf16.mxu1 %v4728_v18  ;;  %v2190_v60 = vmax.f32 %v2182_v55, 0.0  ;;  %v4788_v14 = vld [vmem:[#allocation16 + $0xbc] ss:$28 sps:$4 sm:$0xff]   ;;  %v4793_v20 = vld [vmem:[#allocation16 + $0xf4] ss:$28 sps:$4 sm:$0xff]  }
 0x4a2   :  { %v2191_v27 = vmax.f32 %v2184_v21, 0.0  ;;  %v4789_v17 = vld [vmem:[#allocation16 + $0x280] ss:$28 sps:$4 sm:$0xff]   ;;  %v4786_v18 = vld [vmem:[#allocation16 + $0xb8] ss:$28 sps:$4 sm:$0xff]  }
 0x4a3   :  { %v5477_v1 = vpack.c.bf16 %v2190_v60, %v2190_v60  ;;  %v4791_v21 = vld [vmem:[#allocation16 + $0xf0] ss:$28 sps:$4 sm:$0xff]   ;;  %v4795_v22 = vld [vmem:[#allocation16 + $0xf8] ss:$28 sps:$4 sm:$0xff]   ;;  %v4796_v16 = vld [vmem:[#allocation16 + $0x128] ss:$28 sps:$4 sm:$0xff]  }
 0x4a4   :  { %v5468_v28 = vpack.c.bf16 %v2191_v27, %v2191_v27  ;;  %3380 = vmatpush1.bf16.msra.mxu0 %v4723_v23  ;;  %3462 = vmatpush1.bf16.msra.mxu1 %v4726_v24  ;;  %v4798_v23 = vld [vmem:[#allocation16 + $0x12c] ss:$28 sps:$4 sm:$0xff]   ;;  %v4839_v60 = vld [vmem:[#allocation16 + $0x358] ss:$28 sps:$4 sm:$0xff]  }
 0x4a5   :  { %3381 = vmatprep.subr.bf16.mxu0 %v4731_v25  ;;  %3463 = vmatprep.subr.bf16.mxu1 %v4734_v26  ;;  %v4799_v24 = vld [vmem:[#allocation16 + $0x2f0] ss:$28 sps:$4 sm:$0xff]   ;;  %v4803_v26 = vld [vmem:[#allocation16 + $0x164] ss:$28 sps:$4 sm:$0xff]  }
 0x4a6   :  { %4166 = vmatprep.mubr.msk.bf16.mxu0 %vm1390_vm0, %v5468_v28  ;;  %4167 = vmatprep.mubr.msk.bf16.mxu1 %vm1390_vm0, %v5468_v28  ;;  %v4800_v25 = vld [vmem:[#allocation16 + $0x130] ss:$28 sps:$4 sm:$0xff]   ;;  %v4804_v27 = vld [vmem:[#allocation16 + $0x328] ss:$28 sps:$4 sm:$0xff]  }
 0x4a7   :  { %v4834_v55 = vld [vmem:[#allocation16 + $0x4b0] ss:$28 sps:$4 sm:$0xff]  }
 0x4a8   :  { %3382 = vmatpush1.bf16.msra.mxu0 %v4729_v29  ;;  %3464 = vmatpush1.bf16.msra.mxu1 %v4732_v30  ;;  %v4801_v29 = vld [vmem:[#allocation16 + $0x160] ss:$28 sps:$4 sm:$0xff]   ;;  %v4805_v30 = vld [vmem:[#allocation16 + $0x168] ss:$28 sps:$4 sm:$0xff]  }
 0x4a9   :  { %3383 = vmatprep.subr.bf16.mxu0 %v4737_v31  ;;  %3465 = vmatprep.subr.bf16.mxu1 %v4740_v32  ;;  %v4808_v31 = vld [vmem:[#allocation16 + $0x19c] ss:$28 sps:$4 sm:$0xff]  }
 0x4aa   :  { %v4809_v32 = vld [vmem:[#allocation16 + $0x360] ss:$28 sps:$4 sm:$0xff]  }
 0x4ac   :  { %3384 = vmatpush1.bf16.msra.mxu0 %v4735_v33  ;;  %3466 = vmatpush1.bf16.msra.mxu1 %v4738_v34  ;;  %v4806_v33 = vld [vmem:[#allocation16 + $0x198] ss:$28 sps:$4 sm:$0xff]   ;;  %v4810_v34 = vld [vmem:[#allocation16 + $0x1a0] ss:$28 sps:$4 sm:$0xff]  }
 0x4ad   :  { %3385 = vmatprep.subr.bf16.mxu0 %v4743_v35  ;;  %3467 = vmatprep.subr.bf16.mxu1 %v4746_v36  ;;  %v4813_v35 = vld [vmem:[#allocation16 + $0x1d4] ss:$28 sps:$4 sm:$0xff]  }
 0x4ae   :  { %v4811_v36 = vld [vmem:[#allocation16 + $0x1d0] ss:$28 sps:$4 sm:$0xff]  }
 0x4b0   :  { %3386 = vmatpush1.bf16.msra.mxu0 %v4741_v37  ;;  %3468 = vmatpush1.bf16.msra.mxu1 %v4744_v38  ;;  %v4814_v37 = vld [vmem:[#allocation16 + $0x398] ss:$28 sps:$4 sm:$0xff]   ;;  %v4817_v38 = vld [vmem:[#allocation16 + $0x20c] ss:$28 sps:$4 sm:$0xff]  }
 0x4b1   :  { %3387 = vmatprep.subr.bf16.mxu0 %v4749_v39  ;;  %3469 = vmatprep.subr.bf16.mxu1 %v4752_v40  ;;  %v4815_v39 = vld [vmem:[#allocation16 + $0x208] ss:$28 sps:$4 sm:$0xff]   ;;  %v4818_v40 = vld [vmem:[#allocation16 + $0x3d0] ss:$28 sps:$4 sm:$0xff]  }
 0x4b4   :  { %3388 = vmatpush1.bf16.msra.mxu0 %v4747_v41  ;;  %3470 = vmatpush1.bf16.msra.mxu1 %v4750_v42  ;;  %v4821_v41 = vld [vmem:[#allocation16 + $0x244] ss:$28 sps:$4 sm:$0xff]  }
 0x4b5   :  { %3389 = vmatprep.subr.bf16.mxu0 %v4755_v43  ;;  %3471 = vmatprep.subr.bf16.mxu1 %v4758_v44  ;;  %v4819_v42 = vld [vmem:[#allocation16 + $0x240] ss:$28 sps:$4 sm:$0xff]   ;;  %v4822_v43 = vld [vmem:[#allocation16 + $0x408] ss:$28 sps:$4 sm:$0xff]  }
 0x4b6   :  { %v4825_v44 = vld [vmem:[#allocation16 + $0x27c] ss:$28 sps:$4 sm:$0xff]  }
 0x4b8   :  { %3390 = vmatpush1.bf16.msra.mxu0 %v4753_v45  ;;  %3472 = vmatpush1.bf16.msra.mxu1 %v4756_v46  ;;  %v4823_v45 = vld [vmem:[#allocation16 + $0x278] ss:$28 sps:$4 sm:$0xff]   ;;  %v4826_v46 = vld [vmem:[#allocation16 + $0x440] ss:$28 sps:$4 sm:$0xff]  }
 0x4b9   :  { %3391 = vmatprep.subr.bf16.mxu0 %v4761_v48  ;;  %3473 = vmatprep.subr.bf16.mxu1 %v4764_v51  ;;  %v4827_v48 = vld [vmem:[#allocation16 + $0x2b0] ss:$28 sps:$4 sm:$0xff]   ;;  %v4830_v51 = vld [vmem:[#allocation16 + $0x478] ss:$28 sps:$4 sm:$0xff]  }
 0x4bc   :  { %3392 = vmatpush1.bf16.msra.mxu0 %v4759_v53  ;;  %3474 = vmatpush1.bf16.msra.mxu1 %v4762_v54  ;;  %v4833_v53 = vld [vmem:[#allocation16 + $0x2ec] ss:$28 sps:$4 sm:$0xff]  }
 0x4bd   :  { %3393 = vmatprep.subr.bf16.mxu0 %v4767_v56  ;;  %3475 = vmatprep.subr.bf16.mxu1 %v4770_v57  ;;  %v4831_v54 = vld [vmem:[#allocation16 + $0x2e8] ss:$28 sps:$4 sm:$0xff]   ;;  %v4835_v57 = vld [vmem:[#allocation16 + $0x320] ss:$28 sps:$4 sm:$0xff]  }
 0x4be   :  { %v4837_v56 = vld [vmem:[#allocation16 + $0x324] ss:$28 sps:$4 sm:$0xff]  }
 0x4c0   :  { %3394 = vmatpush1.bf16.msra.mxu0 %v4765_v58  ;;  %3476 = vmatpush1.bf16.msra.mxu1 %v4768_v59  ;;  %v4838_v58 = vld [vmem:[#allocation16 + $0x4e8] ss:$28 sps:$4 sm:$0xff]   ;;  %v4841_v59 = vld [vmem:[#allocation16 + $0x35c] ss:$28 sps:$4 sm:$0xff]  }
 0x4c1   :  { %3500 = vmatprep.subr.bf16.mxu0 %v4773_v61  ;;  %4199 = vmatprep.subr.bf16.mxu1 %v4774_v62  ;;  %v4842_v61 = vld [vmem:[#allocation16 + $0x520] ss:$28 sps:$4 sm:$0xff]   ;;  %v4845_v62 = vld [vmem:[#allocation16 + $0x394] ss:$28 sps:$4 sm:$0xff]  }
 0x4c3   :  { %3410 = vmatmul.mubr.bf16.vlgmr.msra.gmra.mrb[8].mxu0 %v5477_v1  ;;  %3492 = vmatmul.mubr.bf16.vlgmr.msra.gmra.mrb[20].mxu1 %v5477_v1 }
 0x4c4   :  { %3501 = vmatpush1.bf16.msra.mxu0 %v4771_v63  ;;  %3532 = vmatprep.mubr.bf16.mxu0 %v5456_v11  ;;  %v4843_v63 = vld [vmem:[#allocation16 + $0x390] ss:$28 sps:$4 sm:$0xff]  }
 0x4c5   :  { %4200 = vmatpush3.bf16.msra.mxu1 %v4775_v2  ;;  %3614 = vmatprep.mubr.bf16.mxu1 %v5456_v11  ;;  %v4794_v11 = vld [vmem:[#allocation16 + $0x2b8] ss:$28 sps:$4 sm:$0xff]  }
 0x4c6   :  { %3502 = vmatprep.subr.bf16.mxu0 %v4778_v3  ;;  %4201 = vmatprep.subr.bf16.mxu1 %v4779_v6  ;;  %v4846_v2 = vld [vmem:[#allocation16 + $0x558] ss:$28 sps:$4 sm:$0xff]   ;;  %v4849_v3 = vld [vmem:[#allocation16 + $0x3cc] ss:$28 sps:$4 sm:$0xff]  }
 0x4c7   :  { %v4847_v6 = vld [vmem:[#allocation16 + $0x3c8] ss:$28 sps:$4 sm:$0xff]  }
 0x4c8   :  { %3503 = vmatpush1.bf16.msra.mxu0 %v4776_v7  ;;  %v4852_v7 = vld [vmem:[#allocation16 + $0x404] ss:$28 sps:$4 sm:$0xff]  }
 0x4c9   :  { %4202 = vmatpush3.bf16.msra.mxu1 %v4780_v8  ;;  %3504 = vmatprep.subr.bf16.mxu0 %v4783_v9  ;;  %v4850_v8 = vld [vmem:[#allocation16 + $0x400] ss:$28 sps:$4 sm:$0xff]  }
 0x4ca   :  { %4203 = vmatprep.subr.bf16.mxu1 %v4784_v10  ;;  %v4855_v9 = vld [vmem:[#allocation16 + $0x43c] ss:$28 sps:$4 sm:$0xff]  }
 0x4cb   :  { %v4853_v10 = vld [vmem:[#allocation16 + $0x438] ss:$28 sps:$4 sm:$0xff]  }
 0x4cc   :  { %3505 = vmatpush1.bf16.msra.mxu0 %v4781_v12  ;;  %v4861_v12 = vld [vmem:[#allocation16 + $0x4ac] ss:$28 sps:$4 sm:$0xff]  }
 0x4cd   :  { %4204 = vmatpush3.bf16.msra.mxu1 %v4785_v13  ;;  %3506 = vmatprep.subr.bf16.mxu0 %v4788_v14  ;;  %v4864_v13 = vld [vmem:[#allocation16 + $0x4e4] ss:$28 sps:$4 sm:$0xff]  }
 0x4ce   :  { %4205 = vmatprep.subr.bf16.mxu1 %v4789_v17  ;;  %v4862_v14 = vld [vmem:[#allocation16 + $0x4e0] ss:$28 sps:$4 sm:$0xff]  }
 0x4cf   :  { %v4867_v17 = vld [vmem:[#allocation16 + $0x51c] ss:$28 sps:$4 sm:$0xff]  }
 0x4d0   :  { %3507 = vmatpush1.bf16.msra.mxu0 %v4786_v18  ;;  %v4865_v18 = vld [vmem:[#allocation16 + $0x518] ss:$28 sps:$4 sm:$0xff]  }
 0x4d1   :  { %4206 = vmatpush3.bf16.msra.mxu1 %v4790_v19  ;;  %3508 = vmatprep.subr.bf16.mxu0 %v4793_v20  ;;  %v4870_v19 = vld [vmem:[#allocation16 + $0x554] ss:$28 sps:$4 sm:$0xff]  }
 0x4d2   :  { %4207 = vmatprep.subr.bf16.mxu1 %v4794_v11  ;;  %v4868_v20 = vld [vmem:[#allocation16 + $0x550] ss:$28 sps:$4 sm:$0xff]   ;;  %v5500_v11 = vld [vmem:[#allocation17] sm:$0x7f] }
 0x4d4   :  { %3509 = vmatpush1.bf16.msra.mxu0 %v4791_v21  ;;  %v2401_v21 = vrot.slane %v5500_v11, %v5423_v50 }
 0x4d5   :  { %4208 = vmatpush3.bf16.msra.mxu1 %v4795_v22  ;;  %3510 = vmatprep.subr.bf16.mxu0 %v4798_v23  ;;  %v2409_v22 = vrot.slane %v5500_v11, %v5431_v4  ;;  %v2405_v23 = vrot.slane %v5500_v11, %v5426_v52 }
 0x4d6   :  { %4209 = vmatprep.subr.bf16.mxu1 %v4799_v24  ;;  %v2413_v24 = vrot.slane %v5500_v11, %v5434_v5 }
 0x4d8   :  { %3511 = vmatpush1.bf16.msra.mxu0 %v4796_v16 }
 0x4d9   :  { %4210 = vmatpush3.bf16.msra.mxu1 %v4800_v25  ;;  %3512 = vmatprep.subr.bf16.mxu0 %v4803_v26 }
 0x4da   :  { %4211 = vmatprep.subr.bf16.mxu1 %v4804_v27 }
 0x4dc   :  { %3513 = vmatpush1.bf16.msra.mxu0 %v4801_v29 }
 0x4dd   :  { %4212 = vmatpush3.bf16.msra.mxu1 %v4805_v30  ;;  %3514 = vmatprep.subr.bf16.mxu0 %v4808_v31 }
 0x4de   :  { %4213 = vmatprep.subr.bf16.mxu1 %v4809_v32 }
 0x4e0   :  { %3515 = vmatpush1.bf16.msra.mxu0 %v4806_v33 }
 0x4e1   :  { %4214 = vmatpush3.bf16.msra.mxu1 %v4810_v34  ;;  %3516 = vmatprep.subr.bf16.mxu0 %v4813_v35 }
 0x4e2   :  { %3622 = vmatprep.subr.bf16.mxu1 %v5198_v0 }
 0x4e4   :  { %3615 = vmatmul.mubr.bf16.vlgmr.msra.gmra.mrb[24].mxu1 %v5460_v15  ;;  %3517 = vmatpush1.bf16.msra.mxu0 %v4811_v36 }
 0x4e5   :  { %3623 = vmatpush1.bf16.msra.mxu1 %v4814_v37  ;;  %4169 = vmatprep.mubr.msk.bf16.mxu1 %vm1390_vm0, %v5468_v28 }
 0x4e6   :  { %3518 = vmatprep.subr.bf16.mxu0 %v4817_v38  ;;  %3624 = vmatprep.subr.bf16.mxu1 %v5198_v0 }
 0x4e8   :  { %3519 = vmatpush1.bf16.msra.mxu0 %v4815_v39 }
 0x4e9   :  { %3625 = vmatpush1.bf16.msra.mxu1 %v4818_v40  ;;  %3520 = vmatprep.subr.bf16.mxu0 %v4821_v41 }
 0x4ea   :  { %3626 = vmatprep.subr.bf16.mxu1 %v5198_v0 }
 0x4ec   :  { %3521 = vmatpush1.bf16.msra.mxu0 %v4819_v42 }
 0x4ed   :  { %3627 = vmatpush1.bf16.msra.mxu1 %v4822_v43  ;;  %3522 = vmatprep.subr.bf16.mxu0 %v4825_v44 }
 0x4ee   :  { %3628 = vmatprep.subr.bf16.mxu1 %v5198_v0 }
 0x4f0   :  { %3523 = vmatpush1.bf16.msra.mxu0 %v4823_v45 }
 0x4f1   :  { %3629 = vmatpush1.bf16.msra.mxu1 %v4826_v46  ;;  %3524 = vmatprep.subr.bf16.mxu0 %v4829_v47 }
 0x4f2   :  { %3630 = vmatprep.subr.bf16.mxu1 %v5198_v0 }
 0x4f4   :  { %3525 = vmatpush1.bf16.msra.mxu0 %v4827_v48 }
 0x4f5   :  { %3631 = vmatpush1.bf16.msra.mxu1 %v4830_v51  ;;  %3526 = vmatprep.subr.bf16.mxu0 %v4833_v53 }
 0x4f6   :  { %3632 = vmatprep.subr.bf16.mxu1 %v5198_v0 }
 0x4f8   :  { %3527 = vmatpush1.bf16.msra.mxu0 %v4831_v54 }
 0x4f9   :  { %3633 = vmatpush1.bf16.msra.mxu1 %v4834_v55  ;;  %3528 = vmatprep.subr.bf16.mxu0 %v4837_v56 }
 0x4fa   :  { %3634 = vmatprep.subr.bf16.mxu1 %v5198_v0 }
 0x4fc   :  { %3529 = vmatpush1.bf16.msra.mxu0 %v4835_v57 }
 0x4fd   :  { %3635 = vmatpush1.bf16.msra.mxu1 %v4838_v58  ;;  %3530 = vmatprep.subr.bf16.mxu0 %v4841_v59 }
 0x4fe   :  { %3636 = vmatprep.subr.bf16.mxu1 %v5198_v0 }
 0x500   :  { %3531 = vmatpush1.bf16.msra.mxu0 %v4839_v60 }
 0x501   :  { %3637 = vmatpush1.bf16.msra.mxu1 %v4842_v61  ;;  %3541 = vmatprep.subr.bf16.mxu0 %v4845_v62 }
 0x502   :  { %3638 = vmatprep.subr.bf16.mxu1 %v5198_v0  ;;  %v4858_v0 = vld [vmem:[#allocation16 + $0x474] ss:$28 sps:$4 sm:$0xff]  }
 0x503   :  { %3533 = vmatmul.mubr.bf16.vlgmr.msra.gmra.mrb[12].mxu0 %v5460_v15  ;;  %v4856_v15 = vld [vmem:[#allocation16 + $0x470] ss:$28 sps:$4 sm:$0xff]  }
 0x504   :  { %3542 = vmatpush1.bf16.msra.mxu0 %v4843_v63  ;;  %4168 = vmatprep.mubr.msk.bf16.mxu0 %vm1390_vm0, %v5468_v28  ;;  %v4859_v28 = vld [vmem:[#allocation16 + $0x4a8] ss:$28 sps:$4 sm:$0xff]  }
 0x505   :  { %3639 = vmatpush1.bf16.msra.mxu1 %v4846_v2  ;;  %3543 = vmatprep.subr.bf16.mxu0 %v4849_v3 }
 0x508   :  { %3655 = vmatmul.mubr.bf16.vlgmr.msra.gmra.mrb[28].mxu1 %v5477_v1  ;;  %3544 = vmatpush1.bf16.msra.mxu0 %v4847_v6 }
 0x509   :  { %3545 = vmatprep.subr.bf16.mxu0 %v4852_v7 }
 0x50c   :  { %3546 = vmatpush1.bf16.msra.mxu0 %v4850_v8 }
 0x50d   :  { %3547 = vmatprep.subr.bf16.mxu0 %v4855_v9 }
 0x510   :  { %3548 = vmatpush1.bf16.msra.mxu0 %v4853_v10 }
 0x511   :  { %3549 = vmatprep.subr.bf16.mxu0 %v4858_v0 }
 0x514   :  { %3550 = vmatpush1.bf16.msra.mxu0 %v4856_v15 }
 0x515   :  { %3551 = vmatprep.subr.bf16.mxu0 %v4861_v12 }
 0x518   :  { %3552 = vmatpush1.bf16.msra.mxu0 %v4859_v28 }
 0x519   :  { %3553 = vmatprep.subr.bf16.mxu0 %v4864_v13 }
 0x51c   :  { %3554 = vmatpush1.bf16.msra.mxu0 %v4862_v14 }
 0x51d   :  { %3555 = vmatprep.subr.bf16.mxu0 %v4867_v17 }
 0x520   :  { %3556 = vmatpush1.bf16.msra.mxu0 %v4865_v18 }
 0x521   :  { %3557 = vmatprep.subr.bf16.mxu0 %v4870_v19 }
 0x524   :  { %3558 = vmatpush1.bf16.msra.mxu0 %v4868_v20 }
 0x527   :  { %3574 = vmatmul.mubr.bf16.vlgmr.msra.gmra.mrb[12].mxu0 %v5477_v1 }
 0x596   :  { %v3411_v16 = vpop.f32.mrb[8].mxu0  ;;  %v3493_v25 = vpop.f32.mrb[20].mxu1 }
 0x597   :  { %v4227_v26 = vadd.f32 %v3411_v16, %v2401_v21  ;;  %v4229_v27 = vadd.f32 %v3493_v25, %v2409_v22  ;;  %v3413_v29 = vpop.f32.mrb[9].mxu0  ;;  %v3495_v1 = vpop.f32.mrb[21].mxu1 }
 0x598   :  { %v4228_v30 = vadd.f32 %v3413_v29, %v2405_v23  ;;  %v4230_v31 = vadd.f32 %v3495_v1, %v2413_v24  ;;  %v3415_v32 = vpop.f32.mrb[10].mxu0  ;;  %v3497_v33 = vpop.f32.mrb[22].mxu1 }
 0x599   :  { %v4170_v50 = vmul.f32 -1.442695, %v4227_v26  ;;  %v4172_v34 = vmul.f32 -1.442695, %v4229_v27  ;;  %v3416_v35 = vpop.f32.mrb[11].mxu0  ;;  %v3498_v4 = vpop.f32.mrb[23].mxu1 }
 0x59a   :  { %v4171_v36 = vmul.f32 -1.442695, %v4228_v30  ;;  %v4173_v37 = vmul.f32 -1.442695, %v4230_v31 }
 0x59b   :  { %4873 = vpow2.f32 %v4170_v50 }
 0x59c   :  { %4875 = vpow2.f32 %v4172_v34 }
 0x59d   :  { %5133 = shalt.err (!%p5130_p0)
}
 0x59e   :  { %s5134_s14 = scalar_lea.hbm %s5552_s11, 128 }
 0x59f   :  { %p5135_p1 = scmp.ne.s32.totalorder %s5552_s11, %s5134_s14  ;;  %p5138_p2 = scmp.lt.u32.totalorder %s5134_s14, %s5552_s11 }
 0x5a1   :  { %p5140_p3 = pnand %p5138_p2, %p5135_p1 }
 0x5a3   :  { %5143 = shalt.err (!%p5140_p3)
}
 0x5a4   :  { %3732 = dma.vmem_to_hbm [thread:$0]  %s3730_s30, 128, %s5552_s11, [#allocation21]   ;;  %4877 = vpow2.f32 %v4171_v36  ;;  %v2424_v56 = vsub.s32 6, %v5420_v49  ;;  %v2416_v7 = vsub.s32 4, %v5420_v49  ;;  %v2420_v8 = vsub.s32 5, %v5420_v49 }
 0x5a5   :  { %4879 = vpow2.f32 %v4173_v37  ;;  %v4874_v52 = vpop.eup %4873  ;;  %s5201_s11 = smov [#allocation19]  }
 0x5a6   :  { %v4876_v5 = vpop.eup %4875  ;;  %v3683_v38 = vadd.f32 1.0, %v4874_v52  ;;  %v2425_v57 = vrot.slane %v5500_v11, %v2424_v56  ;;  %v2417_v10 = vrot.slane %v5500_v11, %v2416_v7  ;;  %v2421_v0 = vrot.slane %v5500_v11, %v2420_v8  ;;  %s3719_s0 = sshll.u32 %s5201_s11, 4  ;;  %s3720_s0 = int_to_ptr.vmem [resolvable:$true] %s3719_s0 }
 0x5a7   :  { %v3685_v40 = vadd.f32 1.0, %v4876_v5  ;;  %s5144_s23 = scalar_lea.vmem %s3720_s0, 896  ;;  %p5149_p5 = scmp.lt.s32.totalorder %s3720_s0, %s3720_s0 }
 0x5a8   :  { %4881 = vrcp.f32 %v3683_v38  ;;  %p5145_p4 = scmp.ne.s32.totalorder %s3720_s0, %s5144_s23  ;;  %p5150_p6 = scmp.lt.s32.totalorder %s5144_s23, %s5144_s23 }
 0x5a9   :  { %4883 = vrcp.f32 %v3685_v40 }
 0x5aa   :  { %p5151_p7 = por %p5150_p6, %p5149_p5 }
 0x5ac   :  { %p5152_p8 = pnand %p5151_p7, %p5145_p4 }
 0x5ae   :  { %v4878_v39 = vpop.eup %4877 }
 0x5af   :  { %v4880_v41 = vpop.eup %4879  ;;  %v3684_v42 = vadd.f32 1.0, %v4878_v39 }
 0x5b0   :  { %v3686_v43 = vadd.f32 1.0, %v4880_v41 }
 0x5b1   :  { %4885 = vrcp.f32 %v3684_v42 }
 0x5b2   :  { %4887 = vrcp.f32 %v3686_v43  ;;  %v4882_v44 = vpop.eup %4881 }
 0x5b3   :  { %v4884_v45 = vpop.eup %4883  ;;  %3704 = vst [vmem:[#allocation19] sm:$0xff] %v4882_v44 }
 0x5b4   :  { %3706 = vst [vmem:[#allocation19 + $0x10] sm:$0xff] %v4884_v45 }
 0x5b7   :  { %v4215_v48 = vpop.f32.mrb[24].mxu1 }
 0x5b8   :  { %v4216_v51 = vpop.f32.mrb[25].mxu1 }
 0x5b9   :  { %v4217_v53 = vadd.f32 %v4216_v51, %v4215_v48  ;;  %v4218_v54 = vpop.f32.mrb[26].mxu1 }
 0x5ba   :  { %v4219_v55 = vpop.f32.mrb[27].mxu1 }
 0x5bb   :  { %v4886_v46 = vpop.eup %4885  ;;  %v3617_v58 = vadd.f32 %v4217_v53, %v2425_v57 }
 0x5bc   :  { %v4888_v47 = vpop.eup %4887  ;;  %3705 = vst [vmem:[#allocation19 + $0x8] sm:$0xff] %v4886_v46 }
 0x5bd   :  { %3707 = vst [vmem:[#allocation19 + $0x18] sm:$0xff] %v4888_v47 }
 0x5db   :  { %v3656_v59 = vpop.f32.mrb[28].mxu1 }
 0x5dc   :  { %v3657_v60 = vadd.f32 %v3656_v59, %v3617_v58  ;;  %v3658_v61 = vpop.f32.mrb[29].mxu1 }
 0x5dd   :  { %v3659_v62 = vpop.f32.mrb[30].mxu1 }
 0x5de   :  { %v4176_v63 = vmul.f32 -1.442695, %v3657_v60  ;;  %v3660_v2 = vpop.f32.mrb[31].mxu1 }
 0x5e0   :  { %4889 = vpow2.f32 %v4176_v63 }
 0x5ea   :  { %v4890_v3 = vpop.eup %4889 }
 0x5eb   :  { %v3689_v6 = vadd.f32 1.0, %v4890_v3 }
 0x5ed   :  { %4891 = vrcp.f32 %v3689_v6 }
 0x5f7   :  { %v4892_v9 = vpop.eup %4891 }
 0x5f8   :  { %3710 = vst.msk [vmem:[#allocation19 + $0x30] sm:$0xff] %vm1390_vm0, %v4892_v9 }
 0x5fa   :  { %v3575_v15 = vpop.f32.mrb[12].mxu0 }
 0x5fb   :  { %v4231_v12 = vadd.f32 %v3575_v15, %v2417_v10  ;;  %v3577_v28 = vpop.f32.mrb[13].mxu0 }
 0x5fc   :  { %v4232_v13 = vadd.f32 %v3577_v28, %v2421_v0  ;;  %v3579_v14 = vpop.f32.mrb[14].mxu0 }
 0x5fd   :  { %v4174_v17 = vmul.f32 -1.442695, %v4231_v12  ;;  %v3580_v18 = vpop.f32.mrb[15].mxu0 }
 0x5fe   :  { %v4175_v19 = vmul.f32 -1.442695, %v4232_v13 }
 0x5ff   :  { %4893 = vpow2.f32 %v4174_v17 }
 0x600   :  { %4895 = vpow2.f32 %v4175_v19 }
 0x609   :  { %v4894_v20 = vpop.eup %4893 }
 0x60a   :  { %v4896_v21 = vpop.eup %4895  ;;  %v3687_v49 = vadd.f32 1.0, %v4894_v20 }
 0x60b   :  { %v3688_v22 = vadd.f32 1.0, %v4896_v21 }
 0x60c   :  { %4897 = vrcp.f32 %v3687_v49 }
 0x60d   :  { %4899 = vrcp.f32 %v3688_v22 }
 0x616   :  { %v4898_v23 = vpop.eup %4897 }
 0x617   :  { %v4900_v11 = vpop.eup %4899  ;;  %3708 = vst [vmem:[#allocation19 + $0x20] sm:$0xff] %v4898_v23 }
 0x618   :  { %3709 = vst [vmem:[#allocation19 + $0x28] sm:$0xff] %v4900_v11 }
 0x619   :  { %5155 = shalt.err (!%p5152_p8)
}
 0x61a   :  { %s5156_s19 = scalar_lea.hbm %s5551_s10, 896 }
 0x61b   :  { %p5157_p9 = scmp.ne.s32.totalorder %s5551_s10, %s5156_s19  ;;  %p5160_p10 = scmp.lt.u32.totalorder %s5156_s19, %s5551_s10 }
 0x61d   :  { %p5162_p11 = pnand %p5160_p10, %p5157_p9 }
 0x61f   :  { %5165 = shalt.err (!%p5162_p11)
}
 0x620   :  { %3722 = dma.vmem_to_hbm [thread:$0]  %s3720_s0, 896, %s5551_s10, [#allocation4]  }
 0x621   :  { %5178 = dma.done.wait [#allocation4], 896  }
 0x622   :  { %5179 = vsyncadd [#allocation4], 4294966400 }
 0x623   :  { %5180 = dma.done.wait [#allocation21], 128  }
 0x624   :  { %5181 = vsyncadd [#allocation21], 4294967168 }
 0x625   :  { %3739 = vsyncpa [#allocation3], 1 }
 0x626   :  { %3740 = vsyncpa [#allocation6], 1 }
 0x627   :  { %3741 = vsyncpa [#allocation9], 1 }
 0x628   :  { %3742 = vsyncpa [#allocation12], 1 }
 0x629   :  { %3743 = vsyncpa [#allocation15], 1 }
 0x62a   :  { %3744 = vsyncpa [#allocation18], 1 }
 0x62b   :  { %3745 = vsyncpa [#allocation4], 1 }
 0x62c   :  { %3746 = vsyncpa [#allocation21], 1 }

</bundles_post_ra>
